<compile_context>
chip_gen: v7x
topology: tpu7x:2x2x1
jax: 0.10.0
libtpu: 0.0.40
codegen_flags: <defaults>
</compile_context>

<pallas_src>
import functools

import jax
import jax.numpy as jnp
from jax import lax
from jax.experimental import pallas as pl
from jax.experimental.pallas import tpu as pltpu


def _round_up(v, m):
    return (v + m - 1) // m * m


# -----------------------------------------------------------------------------
# Pallas kernel: full KMeans fit.
#   grid          : (n_iter, num_row_tiles)   -- both axes carried ("arbitrary")
#   x_ref   [TN, Hp] bf16 : embedding row tile; columns 0..h-1 data, column h
#                           is 1.0 for real rows / 0.0 for padded rows, rest 0
#   c0_ref  [Kp, Hp] f32  : initial centers (pad rows / lanes >= h are zero)
#   c_ref   [Kp, Hp] f32  : OUTPUT, resident in VMEM across the whole grid;
#                           used as the carried "current centers" buffer
#   acc_ref [Kp, Hp] f32  : scratch; per-cluster sums (lanes < h) and counts
#                           (lane h), accumulated over the row tiles
# -----------------------------------------------------------------------------
def _kmeans_kernel(x_ref, c0_ref, c_ref, acc_ref, *, k, h):
    t = pl.program_id(0)            # Lloyd iteration
    i = pl.program_id(1)            # row tile
    nt = pl.num_programs(1)

    @pl.when(jnp.logical_and(t == 0, i == 0))
    def _():                         # load the initial centers once
        c_ref[...] = c0_ref[...]

    @pl.when(i == 0)
    def _():                         # new accumulation for this iteration
        acc_ref[...] = jnp.zeros_like(acc_ref)

    x = x_ref[...]                   # [TN, Hp] bf16
    c = c_ref[...]                   # [Kp, Hp] f32 (lanes >= h are zero)
    kp, hp = c.shape

    # Distance rhs:  c2[k, j<h] = -2*c[k, j],  c2[k, h] = ||c_k||^2 (picked up
    # by x's ones column), c2[k, j>h] = 0.  Then
    #   d[n, k] = ||c_k||^2 - 2 x_n . c_k     (||x||^2 dropped: argmin-invariant)
    lane = lax.broadcasted_iota(jnp.int32, (kp, hp), 1)
    cc = jnp.sum(c * c, axis=-1, keepdims=True)                    # [Kp, 1] f32
    c2 = jnp.where(lane == h, cc, -2.0 * c)                        # [Kp, Hp]

    d = lax.dot_general(
        x, c2.astype(x.dtype),
        dimension_numbers=(((1,), (1,)), ((), ())),                # contract Hp
        preferred_element_type=jnp.float32)                        # [TN, Kp]

    # Hard assignment (first-min tie break); only real clusters (< k) can win.
    kiota = lax.broadcasted_iota(jnp.int32, d.shape, 1)            # [TN, Kp]
    d = jnp.where(kiota < k, d, 1e30)
    mind = jnp.min(d, axis=-1, keepdims=True)                      # [TN, 1]
    idx = jnp.min(jnp.where(d <= mind, kiota, kp),
                  axis=-1, keepdims=True)                          # [TN, 1]
    onehot = (kiota == idx).astype(x.dtype)                        # [TN, Kp]

    # Per-cluster sums (lanes < h) and counts (lane h) in one MXU pass; padded
    # (all-zero) x rows contribute nothing, so no row masking is needed.
    acc_ref[...] += lax.dot_general(
        onehot, x,
        dimension_numbers=(((0,), (0,)), ((), ())),                # contract TN
        preferred_element_type=jnp.float32)                        # [Kp, Hp]

    @pl.when(i == nt - 1)
    def _():                         # finalize this Lloyd iteration
        acc = acc_ref[...]
        counts = jnp.sum(jnp.where(lane == h, acc, 0.0),
                         axis=-1, keepdims=True)                   # [Kp, 1]
        newc = jnp.where(counts > 0.0,
                         acc / jnp.maximum(counts, 1.0),
                         c)                                        # empty: keep old
        c_ref[...] = jnp.where(lane < h, newc, 0.0)                # zero count/pad lanes


@functools.partial(
    jax.jit, static_argnames=("num_class", "n_iter", "max_tile_n"))
def _kmeans_fit(embeds, labels, *, num_class, n_iter=10, max_tile_n=1024):
    """Deterministic KMeans 'pretrain': class-mean init + n_iter Lloyd steps."""
    n, h = embeds.shape
    k = num_class
    kp = _round_up(k, 128)            # lane-dense cluster axis
    hp = _round_up(h + 1, 128)        # data lanes + ones/count column, lane-dense

    compute_dtype = jnp.bfloat16      # halves the dominant HBM/VMEM x stream
    x_q = embeds.astype(compute_dtype).astype(jnp.float32)

    # Deterministic init: mean of the embeddings sharing each label.
    onehot0 = (labels[:, None] == jnp.arange(k)[None, :]).astype(jnp.float32)
    cnt0 = jnp.maximum(jnp.sum(onehot0, axis=0, keepdims=True), 1.0)   # [1, K]
    init_centers = (onehot0.T @ x_q) / cnt0.T                          # [K, H]
    c0 = jnp.zeros((kp, hp), jnp.float32).at[:k, :h].set(init_centers)

    # Row tiling (sublane-aligned); pad rows are all-zero incl. the ones column.
    tile_n = _round_up(min(max_tile_n, n), 8)
    n_pad = _round_up(n, tile_n)
    nt = n_pad // tile_n

    x_aug = jnp.zeros((n_pad, hp), compute_dtype)
    x_aug = x_aug.at[:n, :h].set(embeds.astype(compute_dtype))
    x_aug = x_aug.at[:n, h].set(jnp.ones((n,), compute_dtype))

    kernel = functools.partial(_kmeans_kernel, k=k, h=h)

    centers = pl.pallas_call(
        kernel,
        out_shape=jax.ShapeDtypeStruct((kp, hp), jnp.float32),
        grid_spec=pltpu.PrefetchScalarGridSpec(
            num_scalar_prefetch=0,
            grid=(n_iter, nt),
            in_specs=[
                pl.BlockSpec((tile_n, hp), lambda t, i: (i, 0)),   # x row tiles
                pl.BlockSpec((kp, hp), lambda t, i: (0, 0)),       # init centers
            ],
            out_specs=pl.BlockSpec((kp, hp), lambda t, i: (0, 0)),  # resident c
            scratch_shapes=[pltpu.VMEM((kp, hp), jnp.float32)],     # sums+counts
        ),
        compiler_params=pltpu.CompilerParams(
            # Both grid axes carry state (centers / accumulator) -> sequential.
            dimension_semantics=("arbitrary", "arbitrary"),
            vmem_limit_bytes=32 * 1024 * 1024,
        ),
    )(x_aug, c0)

    return centers[:k, :h]                                          # [K, H]


class DeepClusterPallas:
    """JAX/Pallas port of Deep_Cluster (utils/node_cluster.py)."""

    def __init__(self, embeds, labels, n_iter=10, max_tile_n=1024):
        self.embeds = embeds
        self.labels = labels
        self.num_class = int(jnp.max(labels)) + 1
        self.hidden = embeds.shape[1]
        # nn.Parameter(torch.tensor(self.pretrain(), dtype=torch.float))
        self.cluster_centers = _kmeans_fit(
            embeds, labels,
            num_class=self.num_class, n_iter=n_iter, max_tile_n=max_tile_n)

    def forward(self):
        # The reference forward() returns None (centers are only a parameter).
        return None


if __name__ == "__main__":
    key = jax.random.PRNGKey(0)
    k_emb, k_lab = jax.random.split(key)

    # Small shapes consistent with the module; N=256 with max_tile_n=128
    # exercises the multi-tile accumulator path (2 row tiles per iteration).
    N, H, K = 256, 32, 7
    embeds = jax.random.normal(k_emb, (N, H), dtype=jnp.float32)
    labels = jax.random.randint(k_lab, (N,), 0, K, dtype=jnp.int32)
    labels = labels.at[:K].set(jnp.arange(K, dtype=jnp.int32))  # all classes present

    model = DeepClusterPallas(embeds, labels, n_iter=10, max_tile_n=128)
    centers = jax.block_until_ready(model.cluster_centers)

    # Sanity: shape, finiteness, and convexity (every center is a mean of
    # (bf16-quantised) embedding rows, so it lies inside their per-dim range).
    assert centers.shape == (model.num_class, model.hidden)
    assert bool(jnp.all(jnp.isfinite(centers)))
    x_q = embeds.astype(jnp.bfloat16).astype(jnp.float32)
    lo = jnp.min(x_q, axis=0) - 1e-2
    hi = jnp.max(x_q, axis=0) + 1e-2
    assert bool(jnp.all((centers >= lo[None, :]) & (centers <= hi[None, :])))

    out = model.forward()
    assert out is None  # matches the reference forward()

    print("KERNEL_OK")
</pallas_src>

<mosaic_0001>
module attributes {stable_mosaic.version = 11 : i64} {
  func.func @_kmeans_kernel(%arg0: i32, %arg1: i32, %arg2: memref<128x128xbf16, #tpu.memory_space<vmem>>, %arg3: memref<128x128xf32, #tpu.memory_space<vmem>>, %arg4: memref<128x128xf32, #tpu.memory_space<vmem>>, %arg5: memref<128x128xf32, #tpu.memory_space<vmem>>) attributes {dimension_semantics = [#tpu.dimension_semantics<arbitrary>, #tpu.dimension_semantics<arbitrary>], iteration_bounds = array<i64: 10, 2>, scalar_prefetch = 0 : i64, scratch_operands = 1 : i64, tpu.core_type = #tpu.core_type<tc>, window_params = [{transform_indices = @transform_0, window_bounds = array<i64: 128, 128>}, {pipeline_mode = #tpu.pipeline_mode<synchronous>, transform_indices = @transform_1, window_bounds = array<i64: 128, 128>}, {pipeline_mode = #tpu.pipeline_mode<synchronous>, transform_indices = @transform_2, window_bounds = array<i64: 128, 128>}]} {
    %c0_i32 = arith.constant 0 : i32
    %0 = arith.cmpi eq, %arg0, %c0_i32 : i32
    %c0_i32_0 = arith.constant 0 : i32
    %1 = arith.cmpi eq, %arg1, %c0_i32_0 : i32
    %2 = arith.andi %0, %1 : i1
    %3 = arith.extui %2 : i1 to i32
    %c0_i32_1 = arith.constant 0 : i32
    %4 = arith.cmpi ne, %3, %c0_i32_1 : i32
    scf.if %4 {
      %c0_18 = arith.constant 0 : index
      %c0_19 = arith.constant 0 : index
      %48 = vector.load %arg3[%c0_18, %c0_19] : memref<128x128xf32, #tpu.memory_space<vmem>>, vector<128x128xf32>
      %c0_20 = arith.constant 0 : index
      %c0_21 = arith.constant 0 : index
      %49 = vector.load %arg4[%c0_20, %c0_21] : memref<128x128xf32, #tpu.memory_space<vmem>>, vector<128x128xf32>
      tpu.vector_store %arg4[%c0_20, %c0_21], %48 {strides = array<i32>} : memref<128x128xf32, #tpu.memory_space<vmem>>, vector<128x128xf32>,
    } else {
    }
    %c0_i32_2 = arith.constant 0 : i32
    %5 = arith.cmpi eq, %arg1, %c0_i32_2 : i32
    %6 = arith.extui %5 : i1 to i32
    %c0_i32_3 = arith.constant 0 : i32
    %7 = arith.cmpi ne, %6, %c0_i32_3 : i32
    scf.if %7 {
      %cst_18 = arith.constant 0.000000e+00 : f32
      %48 = vector.broadcast %cst_18 : f32 to vector<128x128xf32>
      %c0_19 = arith.constant 0 : index
      %c0_20 = arith.constant 0 : index
      %49 = vector.load %arg5[%c0_19, %c0_20] : memref<128x128xf32, #tpu.memory_space<vmem>>, vector<128x128xf32>
      tpu.vector_store %arg5[%c0_19, %c0_20], %48 {strides = array<i32>} : memref<128x128xf32, #tpu.memory_space<vmem>>, vector<128x128xf32>,
    } else {
    }
    %c0 = arith.constant 0 : index
    %c0_4 = arith.constant 0 : index
    %8 = vector.load %arg2[%c0, %c0_4] : memref<128x128xbf16, #tpu.memory_space<vmem>>, vector<128x128xbf16>
    %c0_5 = arith.constant 0 : index
    %c0_6 = arith.constant 0 : index
    %9 = vector.load %arg4[%c0_5, %c0_6] : memref<128x128xf32, #tpu.memory_space<vmem>>, vector<128x128xf32>
    %10 = tpu.iota {dimensions = array<i32: 1>} : vector<128x128xi32>
    %11 = arith.mulf %9, %9 : vector<128x128xf32>
    %cst = arith.constant dense<0.000000e+00> : vector<128xf32>
    %12 = vector.multi_reduction <add>, %11, %cst [1] : vector<128x128xf32> to vector<128xf32>
    %13 = vector.shape_cast %12 : vector<128xf32> to vector<128x1xf32>
    %c32_i32 = arith.constant 32 : i32
    %14 = vector.broadcast %c32_i32 : i32 to vector<128x128xi32>
    %15 = arith.cmpi eq, %10, %14 : vector<128x128xi32>
    %cst_7 = arith.constant -2.000000e+00 : f32
    %16 = vector.broadcast %cst_7 : f32 to vector<128x128xf32>
    %17 = arith.mulf %16, %9 : vector<128x128xf32>
    %18 = vector.shape_cast %13 : vector<128x1xf32> to vector<128x1xf32>
    %19 = vector.broadcast %18 : vector<128x1xf32> to vector<128x128xf32>
    %20 = arith.select %15, %19, %17 : vector<128x128xi1>, vector<128x128xf32>
    %21 = arith.truncf %20 : vector<128x128xf32> to vector<128x128xbf16>
    %cst_8 = arith.constant dense<0.000000e+00> : vector<128x128xf32>
    %22 = tpu.matmul %8, %21, %cst_8 {dimension_numbers = #tpu.dot_dimension_numbers<[1], [1], [0], [0], [0, 0, 1, 0], [], []>} : vector<128x128xbf16>, vector<128x128xbf16>, vector<128x128xf32> -> vector<128x128xf32>
    %23 = tpu.iota {dimensions = array<i32: 1>} : vector<128x128xi32>
    %c7_i32 = arith.constant 7 : i32
    %24 = vector.broadcast %c7_i32 : i32 to vector<128x128xi32>
    %25 = arith.cmpi slt, %23, %24 : vector<128x128xi32>
    %cst_9 = arith.constant 1.000000e+30 : f32
    %26 = vector.broadcast %cst_9 : f32 to vector<128x128xf32>
    %27 = arith.select %25, %22, %26 : vector<128x128xi1>, vector<128x128xf32>
    %cst_10 = arith.constant dense<0x7F800000> : vector<128xf32>
    %28 = vector.multi_reduction <minimumf>, %27, %cst_10 [1] : vector<128x128xf32> to vector<128xf32>
    %29 = vector.shape_cast %28 : vector<128xf32> to vector<128x1xf32>
    %30 = vector.broadcast %29 : vector<128x1xf32> to vector<128x128xf32>
    %31 = arith.cmpf ole, %27, %30 : vector<128x128xf32>
    %c128_i32 = arith.constant 128 : i32
    %32 = vector.broadcast %c128_i32 : i32 to vector<128x128xi32>
    %33 = arith.select %31, %23, %32 : vector<128x128xi1>, vector<128x128xi32>
    %cst_11 = arith.constant dense<2147483647> : vector<128xi32>
    %34 = vector.multi_reduction <minsi>, %33, %cst_11 [1] : vector<128x128xi32> to vector<128xi32>
    %35 = vector.shape_cast %34 : vector<128xi32> to vector<128x1xi32>
    %36 = vector.broadcast %35 : vector<128x1xi32> to vector<128x128xi32>
    %37 = arith.cmpi eq, %23, %36 : vector<128x128xi32>
    %38 = arith.extui %37 : vector<128x128xi1> to vector<128x128xi32>
    %39 = arith.sitofp %38 : vector<128x128xi32> to vector<128x128xf32>
    %40 = arith.truncf %39 : vector<128x128xf32> to vector<128x128xbf16>
    %c0_12 = arith.constant 0 : index
    %c0_13 = arith.constant 0 : index
    %41 = vector.load %arg5[%c0_12, %c0_13] : memref<128x128xf32, #tpu.memory_space<vmem>>, vector<128x128xf32>
    %cst_14 = arith.constant dense<0.000000e+00> : vector<128x128xf32>
    %42 = tpu.matmul %40, %8, %cst_14 {dimension_numbers = #tpu.dot_dimension_numbers<[0], [0], [1], [1], [0, 1, 1, 1], [], []>} : vector<128x128xbf16>, vector<128x128xbf16>, vector<128x128xf32> -> vector<128x128xf32>
    %43 = arith.addf %41, %42 : vector<128x128xf32>
    %c0_15 = arith.constant 0 : index
    %c0_16 = arith.constant 0 : index
    %44 = vector.load %arg5[%c0_15, %c0_16] : memref<128x128xf32, #tpu.memory_space<vmem>>, vector<128x128xf32>
    tpu.vector_store %arg5[%c0_15, %c0_16], %43 {strides = array<i32>} : memref<128x128xf32, #tpu.memory_space<vmem>>, vector<128x128xf32>,
    %c1_i32 = arith.constant 1 : i32
    %45 = arith.cmpi eq, %arg1, %c1_i32 : i32
    %46 = arith.extui %45 : i1 to i32
    %c0_i32_17 = arith.constant 0 : i32
    %47 = arith.cmpi ne, %46, %c0_i32_17 : i32
    scf.if %47 {
      %c0_18 = arith.constant 0 : index
      %c0_19 = arith.constant 0 : index
      %48 = vector.load %arg5[%c0_18, %c0_19] : memref<128x128xf32, #tpu.memory_space<vmem>>, vector<128x128xf32>
      %c32_i32_20 = arith.constant 32 : i32
      %49 = vector.broadcast %c32_i32_20 : i32 to vector<128x128xi32>
      %50 = arith.cmpi eq, %10, %49 : vector<128x128xi32>
      %cst_21 = arith.constant 0.000000e+00 : f32
      %51 = vector.broadcast %cst_21 : f32 to vector<128x128xf32>
      %52 = arith.select %50, %48, %51 : vector<128x128xi1>, vector<128x128xf32>
      %cst_22 = arith.constant dense<0.000000e+00> : vector<128xf32>
      %53 = vector.multi_reduction <add>, %52, %cst_22 [1] : vector<128x128xf32> to vector<128xf32>
      %54 = vector.shape_cast %53 : vector<128xf32> to vector<128x1xf32>
      %cst_23 = arith.constant 0.000000e+00 : f32
      %55 = vector.broadcast %cst_23 : f32 to vector<128x1xf32>
      %56 = arith.cmpf ogt, %54, %55 : vector<128x1xf32>
      %cst_24 = arith.constant 1.000000e+00 : f32
      %57 = vector.broadcast %cst_24 : f32 to vector<128x1xf32>
      %58 = arith.maximumf %54, %57 : vector<128x1xf32>
      %59 = vector.broadcast %58 : vector<128x1xf32> to vector<128x128xf32>
      %60 = arith.divf %48, %59 : vector<128x128xf32>
      %61 = vector.shape_cast %56 : vector<128x1xi1> to vector<128x1xi1>
      %62 = vector.broadcast %61 : vector<128x1xi1> to vector<128x128xi1>
      %63 = arith.select %62, %60, %9 : vector<128x128xi1>, vector<128x128xf32>
      %c32_i32_25 = arith.constant 32 : i32
      %64 = vector.broadcast %c32_i32_25 : i32 to vector<128x128xi32>
      %65 = arith.cmpi slt, %10, %64 : vector<128x128xi32>
      %cst_26 = arith.constant 0.000000e+00 : f32
      %66 = vector.broadcast %cst_26 : f32 to vector<128x128xf32>
      %67 = arith.select %65, %63, %66 : vector<128x128xi1>, vector<128x128xf32>
      %c0_27 = arith.constant 0 : index
      %c0_28 = arith.constant 0 : index
      %68 = vector.load %arg4[%c0_27, %c0_28] : memref<128x128xf32, #tpu.memory_space<vmem>>, vector<128x128xf32>
      tpu.vector_store %arg4[%c0_27, %c0_28], %67 {strides = array<i32>} : memref<128x128xf32, #tpu.memory_space<vmem>>, vector<128x128xf32>,
    } else {
    }
    return
  }
  func.func @transform_0(%arg0: i32, %arg1: i32) -> (i32, i32) {
    %c0_i32 = arith.constant 0 : i32
    %c0_i32_0 = arith.constant 0 : i32
    return %arg1, %c0_i32 : i32, i32
  }
  func.func @transform_1(%arg0: i32, %arg1: i32) -> (i32, i32) {
    %c0_i32 = arith.constant 0 : i32
    %c0_i32_0 = arith.constant 0 : i32
    %c0_i32_1 = arith.constant 0 : i32
    return %c0_i32, %c0_i32_0 : i32, i32
  }
  func.func @transform_2(%arg0: i32, %arg1: i32) -> (i32, i32) {
    %c0_i32 = arith.constant 0 : i32
    %c0_i32_0 = arith.constant 0 : i32
    %c0_i32_1 = arith.constant 0 : i32
    return %c0_i32, %c0_i32_0 : i32, i32
  }
}

</mosaic_0001>

<bundles_post_ra>
// kernel: _kmeans_fit.1
= control target key start
LH: loop header
LB: loop body
LE: loop exit
PB: predicated region body
PF: predicated region fallthrough
CT: control target
= control target key end

     0   :  { %s1512_s9 = smov 0   ;;  %s1514_s10 = smov 0   ;;  %s2404_s0 = inlined_call_operand.vmem [shape: bf16[256,128], index: 0, kind: input, shape index: {}]   ;;  %s2405_s1 = inlined_call_operand.vmem [shape: f32[128,128], index: 1, kind: input, shape index: {}]   ;;  %s2406_s2 = inlined_call_operand.vmem [shape: f32[128,128], index: 2, kind: output, shape index: {}]  }
   0x1   :  { %s1516_s11 = smov 0   ;;  %s1518_s12 = smov 0  }
   0x2   :  { %s1520_s13 = smov 0  }
   0x3 LB: > { %s21_s14 = sadd.s32 1, %s1485_s11  ;;  %s24_s15 = sadd.s32 1, %s1489_s12  ;;  %s1493_s13 = sphi %s1520_s13, %s12_s13   ;;  %s1489_s12 = sphi %s1518_s12, %s2410_s12   ;;  %s1485_s11 = sphi %s1516_s11, %s2409_s11   ;;  %s1481_s10 = sphi %s1514_s10, %s2408_s10   ;;  %s1477_s9 = sphi %s1512_s9, %s2407_s9  }
   0x4   : > { %p22_p0 = scmp.ge.s32.totalorder %s21_s14, 2  ;;  %p1246_p1 = scmp.ge.s32.totalorder %s1493_s13, 1 }
   0x5   : > { %p120_p2 = scmp.lt.s32.totalorder %s1493_s13, 21 }
   0x6   : > { %s2412_s14 = smov (%p22_p0, %s21_s14), 0  ;;  %s2414_s15 = smov (!%p22_p0, %s24_s15), %s1489_s12 }
   0x7   : > { %p121_p3 = pnand %p1246_p1, %p120_p2  ;;  %p26_p4 = scmp.ge.s32.totalorder %s2414_s15, 10 }
   0x8   : > { %s1247_s16 = sshll.u32 (!%p121_p3), %s1477_s9, 4  ;;  %p144_p5 = scmp.eq.s32.totalorder (!%p121_p3), %s1481_s10, 0 }
   0x9   : > { %s2416_s15 = smov (%p26_p4, %s2414_s15), 0  ;;  %124 = sbr.rel (%p121_p3) target bundleno = 1435 (0x59b), region = 28 }
   0xa   : > { %p138_p6 = scmp.lt.s32.totalorder (!%p121_p3), %s1247_s16, 31  ;;  %p145_p7 = scmp.eq.s32.totalorder (!%p121_p3), %s1477_s9, 0 }
   0xc   : > { %p146_p8 = pnand (!%p121_p3), %p145_p7, %p144_p5 }
  0x10   : > { %s2418_s16 = smov (!%p138_p6, %s1247_s16), 31  ;;  %149 = sbr.rel (%p146_p8) target bundleno = 26 (0x1a), region = 32 }
  0x11   : > { %s1248_s17 = sshll.u32 %s2418_s16, 2  ;;  %v150_v0 = vld [vmem:[%s2405_s1] sm:$0xff] (!%p146_p8)  ;;  %v151_v1 = vld [vmem:[%s2405_s1 + $0x8] sm:$0xff] (!%p146_p8)  ;;  %v152_v2 = vld [vmem:[%s2405_s1 + $0x10] sm:$0xff] (!%p146_p8) }
  0x12   : > { %s1549_s20 = scalar_lea.vmem %s2404_s0, %s1248_s17  ;;  %166 = vst [vmem:[%s2406_s2] sm:$0xff] (!%p146_p8), %v150_v0  ;;  %167 = vst [vmem:[%s2406_s2 + $0x8] sm:$0xff] (!%p146_p8), %v151_v1  ;;  %v153_v3 = vld [vmem:[%s2405_s1 + $0x18] sm:$0xff] (!%p146_p8)  ;;  %v154_v4 = vld [vmem:[%s2405_s1 + $0x20] sm:$0xff] (!%p146_p8) }
  0x13   : > { %168 = vst [vmem:[%s2406_s2 + $0x10] sm:$0xff] (!%p146_p8), %v152_v2  ;;  %v155_v5 = vld [vmem:[%s2405_s1 + $0x28] sm:$0xff] (!%p146_p8)  ;;  %169 = vst [vmem:[%s2406_s2 + $0x18] sm:$0xff] (!%p146_p8), %v153_v3  ;;  %v156_v6 = vld [vmem:[%s2405_s1 + $0x30] sm:$0xff] (!%p146_p8) }
  0x14   : > { %170 = vst [vmem:[%s2406_s2 + $0x20] sm:$0xff] (!%p146_p8), %v154_v4  ;;  %171 = vst [vmem:[%s2406_s2 + $0x28] sm:$0xff] (!%p146_p8), %v155_v5  ;;  %v157_v7 = vld [vmem:[%s2405_s1 + $0x38] sm:$0xff] (!%p146_p8)  ;;  %v158_v8 = vld [vmem:[%s2405_s1 + $0x40] sm:$0xff] (!%p146_p8) }
  0x15   : > { %172 = vst [vmem:[%s2406_s2 + $0x30] sm:$0xff] (!%p146_p8), %v156_v6  ;;  %173 = vst [vmem:[%s2406_s2 + $0x38] sm:$0xff] (!%p146_p8), %v157_v7  ;;  %v159_v9 = vld [vmem:[%s2405_s1 + $0x48] sm:$0xff] (!%p146_p8)  ;;  %v160_v10 = vld [vmem:[%s2405_s1 + $0x50] sm:$0xff] (!%p146_p8) }
  0x16   : > { %174 = vst [vmem:[%s2406_s2 + $0x40] sm:$0xff] (!%p146_p8), %v158_v8  ;;  %v161_v11 = vld [vmem:[%s2405_s1 + $0x58] sm:$0xff] (!%p146_p8)  ;;  %175 = vst [vmem:[%s2406_s2 + $0x48] sm:$0xff] (!%p146_p8), %v159_v9  ;;  %v162_v12 = vld [vmem:[%s2405_s1 + $0x60] sm:$0xff] (!%p146_p8) }
  0x17   : > { %176 = vst [vmem:[%s2406_s2 + $0x50] sm:$0xff] %v160_v10  ;;  %177 = vst [vmem:[%s2406_s2 + $0x58] sm:$0xff] %v161_v11  ;;  %v163_v13 = vld [vmem:[%s2405_s1 + $0x68] sm:$0xff]  ;;  %v164_v14 = vld [vmem:[%s2405_s1 + $0x70] sm:$0xff] }
  0x18   : > { %178 = vst [vmem:[%s2406_s2 + $0x60] sm:$0xff] %v162_v12  ;;  %179 = vst [vmem:[%s2406_s2 + $0x68] sm:$0xff] %v163_v13  ;;  %v165_v15 = vld [vmem:[%s2405_s1 + $0x78] sm:$0xff] }
  0x19   : > { %180 = vst [vmem:[%s2406_s2 + $0x70] sm:$0xff] %v164_v14  ;;  %181 = vst [vmem:[%s2406_s2 + $0x78] sm:$0xff] %v165_v15 }
  0x1a PF: > { %p1249_p9 = scmp.ne.s32.totalorder %s1477_s9, 0 }
  0x1b   : > { %v1495_v16 = vmov (!%p1249_p9), 0.0  }
  0x1c   : > { %184 = sbr.rel (%p1249_p9) target bundleno = 36 (0x24), region = 36  ;;  %185 = vst [vmem:[#allocation2] sm:$0xff] (!%p1249_p9), %v1495_v16  ;;  %186 = vst [vmem:[#allocation2 + $0x8] sm:$0xff] (!%p1249_p9), %v1495_v16 }
  0x1d   : > { %187 = vst [vmem:[#allocation2 + $0x10] sm:$0xff] (!%p1249_p9), %v1495_v16  ;;  %188 = vst [vmem:[#allocation2 + $0x18] sm:$0xff] (!%p1249_p9), %v1495_v16 }
  0x1e   : > { %189 = vst [vmem:[#allocation2 + $0x20] sm:$0xff] (!%p1249_p9), %v1495_v16  ;;  %190 = vst [vmem:[#allocation2 + $0x28] sm:$0xff] (!%p1249_p9), %v1495_v16 }
  0x1f   : > { %191 = vst [vmem:[#allocation2 + $0x30] sm:$0xff] (!%p1249_p9), %v1495_v16  ;;  %192 = vst [vmem:[#allocation2 + $0x38] sm:$0xff] (!%p1249_p9), %v1495_v16 }
  0x20   : > { %193 = vst [vmem:[#allocation2 + $0x40] sm:$0xff] (!%p1249_p9), %v1495_v16  ;;  %194 = vst [vmem:[#allocation2 + $0x48] sm:$0xff] (!%p1249_p9), %v1495_v16 }
  0x21   : > { %195 = vst [vmem:[#allocation2 + $0x50] sm:$0xff] (!%p1249_p9), %v1495_v16  ;;  %196 = vst [vmem:[#allocation2 + $0x58] sm:$0xff] (!%p1249_p9), %v1495_v16 }
  0x22   : > { %197 = vst [vmem:[#allocation2 + $0x60] sm:$0xff] (!%p1249_p9), %v1495_v16  ;;  %198 = vst [vmem:[#allocation2 + $0x68] sm:$0xff] (!%p1249_p9), %v1495_v16 }
  0x23   : > { %199 = vst [vmem:[#allocation2 + $0x70] sm:$0xff] %v1495_v16  ;;  %200 = vst [vmem:[#allocation2 + $0x78] sm:$0xff] %v1495_v16 }
  0x24 PF: > { %v1651_v17 = vld [vmem:[%s2406_s2] sm:$0xff]  ;;  %v1656_v18 = vld [vmem:[%s2406_s2 + $0x10] sm:$0xff]  ;;  %v1661_v19 = vld [vmem:[%s2406_s2 + $0x8] sm:$0xff]  ;;  %v233_v57 = vlaneseq  ;;  %p1274_p10 = scmp.ne.s32.totalorder %s1477_s9, 1 }
  0x25   : > { %v235_v20 = vmul.f32 %v1651_v17, %v1651_v17  ;;  %v237_v21 = vmul.f32 %v1656_v18, %v1656_v18  ;;  %v1670_v22 = vld [vmem:[%s2406_s2 + $0x18] sm:$0xff]  ;;  %v236_v23 = vmul.f32 %v1661_v19, %v1661_v19  ;;  %v1679_v25 = vld [vmem:[%s2406_s2 + $0x28] sm:$0xff]  ;;  %v1684_v26 = vld [vmem:[%s2406_s2 + $0x20] sm:$0xff]  ;;  %v286_v59 = vmul.f32 -2.0, %v1656_v18 }
  0x26   : > { %v238_v24 = vmul.f32 %v1670_v22, %v1670_v22  ;;  %v240_v27 = vmul.f32 %v1679_v25, %v1679_v25  ;;  %v239_v28 = vmul.f32 %v1684_v26, %v1684_v26  ;;  %v1693_v29 = vld [vmem:[%s2406_s2 + $0x38] sm:$0xff]  ;;  %v1698_v30 = vld [vmem:[%s2406_s2 + $0x30] sm:$0xff]  ;;  %v1707_v33 = vld [vmem:[%s2406_s2 + $0x48] sm:$0xff]  ;;  %v1796_v58 = vand.u32 127, %v233_v57 }
  0x27   : > { %251 = vadd.xlane.f32.xlu0 %v235_v20  ;;  %255 = vadd.xlane.f32.xlu1 %v237_v21  ;;  %v242_v31 = vmul.f32 %v1693_v29, %v1693_v29  ;;  %v241_v32 = vmul.f32 %v1698_v30, %v1698_v30  ;;  %v1712_v34 = vld [vmem:[%s2406_s2 + $0x40] sm:$0xff]  ;;  %v244_v35 = vmul.f32 %v1707_v33, %v1707_v33  ;;  %v1721_v37 = vld [vmem:[%s2406_s2 + $0x58] sm:$0xff]  ;;  %v1726_v38 = vld [vmem:[%s2406_s2 + $0x50] sm:$0xff]  ;;  %v284_v62 = vmul.f32 -2.0, %v1651_v17 }
  0x28   : > { %v243_v36 = vmul.f32 %v1712_v34, %v1712_v34  ;;  %v246_v39 = vmul.f32 %v1721_v37, %v1721_v37  ;;  %v245_v40 = vmul.f32 %v1726_v38, %v1726_v38  ;;  %v1735_v41 = vld [vmem:[%s2406_s2 + $0x68] sm:$0xff]  ;;  %v1740_v42 = vld [vmem:[%s2406_s2 + $0x60] sm:$0xff]  ;;  %v1749_v45 = vld [vmem:[%s2406_s2 + $0x78] sm:$0xff]  ;;  %v285_v63 = vmul.f32 -2.0, %v1661_v19 }
  0x29   : > { %v248_v43 = vmul.f32 %v1735_v41, %v1735_v41  ;;  %v247_v44 = vmul.f32 %v1740_v42, %v1740_v42  ;;  %v1754_v46 = vld [vmem:[%s2406_s2 + $0x70] sm:$0xff]  ;;  %v250_v47 = vmul.f32 %v1749_v45, %v1749_v45  ;;  %v1415_v49 = vld [vmem:[%s1549_s20] sm:$0xff]   ;;  %v1762_v50 = vld [vmem:[%s1549_s20 + $0x8] sm:$0xff]   ;;  %v287_v0 = vmul.f32 -2.0, %v1670_v22 }
  0x2a   : > { %v249_v48 = vmul.f32 %v1754_v46, %v1754_v46  ;;  %1325 = vmatprep.mubr.bf16.mxu0 %v1415_v49  ;;  %1341 = vmatprep.subr.bf16.mxu1 %v1415_v49  ;;  %v1766_v51 = vld [vmem:[%s1549_s20 + $0x10] sm:$0xff]   ;;  %v1771_v52 = vld [vmem:[%s1549_s20 + $0x18] sm:$0xff]   ;;  %v1776_v53 = vld [vmem:[%s1549_s20 + $0x20] sm:$0xff]   ;;  %vm283_vm0 = vcmp.eq.s32.totalorder %v1796_v58, 32  ;;  %v289_v2 = vmul.f32 -2.0, %v1679_v25  ;;  %v288_v5 = vmul.f32 -2.0, %v1684_v26 }
  0x2b   : > { %253 = vadd.xlane.f32.xlu0 %v236_v23  ;;  %257 = vadd.xlane.f32.xlu1 %v238_v24  ;;  %v1781_v54 = vld [vmem:[%s1549_s20 + $0x28] sm:$0xff]   ;;  %v1786_v55 = vld [vmem:[%s1549_s20 + $0x30] sm:$0xff]   ;;  %v1791_v56 = vld [vmem:[%s1549_s20 + $0x38] sm:$0xff]   ;;  %v291_v13 = vmul.f32 -2.0, %v1693_v29  ;;  %v290_v14 = vmul.f32 -2.0, %v1698_v30  ;;  %v293_v24 = vmul.f32 -2.0, %v1707_v33 }
  0x2c   : > { %1342 = vmatpush3.bf16.msra.mxu1 %v1415_v49  ;;  %v297_v57 = vmul.f32 -2.0, %v1735_v41  ;;  %vm469_vm1 = vcmp.lt.s32.totalorder %v1796_v58, 7 }
  0x2d   : > { %1343 = vmatprep.subr.bf16.mxu1 %v1762_v50 }
  0x2f   : > { %261 = vadd.xlane.f32.xlu1 %v240_v27  ;;  %259 = vadd.xlane.f32.xlu0 %v239_v28  ;;  %v292_v27 = vmul.f32 -2.0, %v1712_v34 }
  0x30   : > { %1344 = vmatpush3.bf16.msra.mxu1 %v1762_v50 }
  0x31   : > { %1345 = vmatprep.subr.bf16.mxu1 %v1766_v51 }
  0x33   : > { %265 = vadd.xlane.f32.xlu1 %v242_v31  ;;  %263 = vadd.xlane.f32.xlu0 %v241_v32 }
  0x34   : > { %1346 = vmatpush3.bf16.msra.mxu1 %v1766_v51 }
  0x35   : > { %1347 = vmatprep.subr.bf16.mxu1 %v1771_v52 }
  0x37   : > { %269 = vadd.xlane.f32.xlu1 %v244_v35  ;;  %267 = vadd.xlane.f32.xlu0 %v243_v36 }
  0x38   : > { %1348 = vmatpush3.bf16.msra.mxu1 %v1771_v52 }
  0x39   : > { %1349 = vmatprep.subr.bf16.mxu1 %v1776_v53 }
  0x3b   : > { %273 = vadd.xlane.f32.xlu1 %v246_v39  ;;  %271 = vadd.xlane.f32.xlu0 %v245_v40  ;;  %v295_v39 = vmul.f32 -2.0, %v1721_v37  ;;  %v294_v40 = vmul.f32 -2.0, %v1726_v38 }
  0x3c   : > { %1350 = vmatpush3.bf16.msra.mxu1 %v1776_v53 }
  0x3d   : > { %1351 = vmatprep.subr.bf16.mxu1 %v1781_v54 }
  0x3f   : > { %277 = vadd.xlane.f32.xlu1 %v248_v43  ;;  %275 = vadd.xlane.f32.xlu0 %v247_v44 }
  0x40   : > { %1352 = vmatpush3.bf16.msra.mxu1 %v1781_v54 }
  0x41   : > { %1353 = vmatprep.subr.bf16.mxu1 %v1786_v55 }
  0x43   : > { %281 = vadd.xlane.f32.xlu1 %v250_v47  ;;  %279 = vadd.xlane.f32.xlu0 %v249_v48 }
  0x44   : > { %1354 = vmatpush3.bf16.msra.mxu1 %v1786_v55 }
  0x45   : > { %1355 = vmatprep.subr.bf16.mxu1 %v1791_v56 }
  0x48   : > { %1356 = vmatpush3.bf16.msra.mxu1 %v1791_v56 }
  0xb4   : > { %v252_v60 = vpop.xlane.xlu0 %251  ;;  %v256_v61 = vpop.xlane.xlu1 %255 }
  0xb5   : > { %v302_v1 = vsel %vm283_vm0, %v256_v61, %v286_v59  ;;  %v300_v6 = vsel %vm283_vm0, %v252_v60, %v284_v62  ;;  %v296_v59 = vmul.f32 -2.0, %v1740_v42 }
  0xb8   : > { %v254_v3 = vpop.xlane.xlu0 %253  ;;  %v258_v4 = vpop.xlane.xlu1 %257 }
  0xb9   : > { %v301_v7 = vsel %vm283_vm0, %v254_v3, %v285_v63  ;;  %v303_v8 = vsel %vm283_vm0, %v258_v4, %v287_v0 }
  0xba   : > { %v317_v9 = vpack.c.bf16 %v303_v8, %v302_v1  ;;  %v316_v10 = vpack.c.bf16 %v301_v7, %v300_v6  ;;  %v299_v1 = vmul.f32 -2.0, %v1749_v45 }
  0xbc   : > { %1309 = vmatprep.subr.bf16.mxu0 %v316_v10  ;;  %v262_v11 = vpop.xlane.xlu1 %261  ;;  %v260_v12 = vpop.xlane.xlu0 %259 }
  0xbd   : > { %1310 = vmatpush3.bf16.xpose.msra.mxu0 %v316_v10  ;;  %v305_v15 = vsel %vm283_vm0, %v262_v11, %v289_v2  ;;  %v304_v16 = vsel %vm283_vm0, %v260_v12, %v288_v5  ;;  %v298_v2 = vmul.f32 -2.0, %v1754_v46 }
  0xbe   : > { %1311 = vmatprep.subr.bf16.mxu0 %v317_v9  ;;  %v318_v20 = vpack.c.bf16 %v305_v15, %v304_v16 }
  0xc0   : > { %v266_v21 = vpop.xlane.xlu1 %265  ;;  %v264_v23 = vpop.xlane.xlu0 %263 }
  0xc1   : > { %v307_v28 = vsel %vm283_vm0, %v266_v21, %v291_v13  ;;  %v306_v31 = vsel %vm283_vm0, %v264_v23, %v290_v14 }
  0xc2   : > { %v319_v32 = vpack.c.bf16 %v307_v28, %v306_v31 }
  0xc4   : > { %v270_v35 = vpop.xlane.xlu1 %269  ;;  %v268_v36 = vpop.xlane.xlu0 %267 }
  0xc5   : > { %1312 = vmatpush3.bf16.xpose.msra.mxu0 %v317_v9  ;;  %v309_v43 = vsel %vm283_vm0, %v270_v35, %v293_v24  ;;  %v308_v44 = vsel %vm283_vm0, %v268_v36, %v292_v27 }
  0xc6   : > { %1313 = vmatprep.subr.bf16.mxu0 %v318_v20  ;;  %v320_v47 = vpack.c.bf16 %v309_v43, %v308_v44 }
  0xc8   : > { %v274_v48 = vpop.xlane.xlu1 %273  ;;  %v272_v49 = vpop.xlane.xlu0 %271 }
  0xc9   : > { %v311_v60 = vsel %vm283_vm0, %v274_v48, %v295_v39  ;;  %v310_v61 = vsel %vm283_vm0, %v272_v49, %v294_v40 }
  0xca   : > { %v321_v62 = vpack.c.bf16 %v311_v60, %v310_v61 }
  0xcc   : > { %v278_v63 = vpop.xlane.xlu1 %277  ;;  %v276_v0 = vpop.xlane.xlu0 %275 }
  0xcd   : > { %1314 = vmatpush3.bf16.xpose.msra.mxu0 %v318_v20  ;;  %v313_v3 = vsel %vm283_vm0, %v278_v63, %v297_v57  ;;  %v312_v4 = vsel %vm283_vm0, %v276_v0, %v296_v59 }
  0xce   : > { %1315 = vmatprep.subr.bf16.mxu0 %v319_v32  ;;  %v322_v5 = vpack.c.bf16 %v313_v3, %v312_v4 }
  0xd0   : > { %v282_v6 = vpop.xlane.xlu1 %281  ;;  %v280_v7 = vpop.xlane.xlu0 %279 }
  0xd1   : > { %v315_v8 = vsel %vm283_vm0, %v282_v6, %v299_v1  ;;  %v314_v9 = vsel %vm283_vm0, %v280_v7, %v298_v2 }
  0xd2   : > { %v323_v10 = vpack.c.bf16 %v315_v8, %v314_v9 }
  0xd5   : > { %1316 = vmatpush3.bf16.xpose.msra.mxu0 %v319_v32 }
  0xd6   : > { %1317 = vmatprep.subr.bf16.mxu0 %v320_v47 }
  0xdd   : > { %1318 = vmatpush3.bf16.xpose.msra.mxu0 %v320_v47 }
  0xde   : > { %1319 = vmatprep.subr.bf16.mxu0 %v321_v62 }
  0xe5   : > { %1320 = vmatpush3.bf16.xpose.msra.mxu0 %v321_v62 }
  0xe6   : > { %1321 = vmatprep.subr.bf16.mxu0 %v322_v5 }
  0xed   : > { %1322 = vmatpush3.bf16.xpose.msra.mxu0 %v322_v5 }
  0xee   : > { %1323 = vmatprep.subr.bf16.mxu0 %v323_v10 }
  0xf5   : > { %1324 = vmatpush3.bf16.xpose.msra.mxu0 %v323_v10 }
  0xfc   : > { %1326 = vmatmul.mubr.bf16.vlgmr.msra.gmra.mrb[0].mxu0 %v1762_v50 }
  0xfd   : > { %1329 = vmatprep.mubr.bf16.mxu0 %v1766_v51 }
 0x104   : > { %1330 = vmatmul.mubr.bf16.gmra.mrb[4].mxu0 %v1771_v52 }
 0x105   : > { %1333 = vmatprep.mubr.bf16.mxu0 %v1776_v53 }
 0x10c   : > { %1334 = vmatmul.mubr.bf16.gmra.mrb[8].mxu0 %v1781_v54 }
 0x10d   : > { %1337 = vmatprep.mubr.bf16.mxu0 %v1786_v55 }
 0x114   : > { %1338 = vmatmul.mubr.bf16.gmra.mrb[12].mxu0 %v1791_v56 }
 0x1cf   : > { %v1327_v11 = vpop.f32.mrb[0].mxu0 }
 0x1d0   : > { %v406_v12 = vpop.f32.mrb[1].mxu0  ;;  %v472_v13 = vsel %vm469_vm1, %v1327_v11, 1e+30 }
 0x1d1   : > { %490 = vmin.xlane.f32.xlu0 %v472_v13  ;;  %v1328_v50 = vpop.f32.mrb[2].mxu0  ;;  %v470_v53 = vsel %vm469_vm1, %v406_v12, 1e+30 }
 0x1d2   : > { %v409_v51 = vpop.f32.mrb[3].mxu0  ;;  %v473_v52 = vsel %vm469_vm1, %v1328_v50, 1e+30 }
 0x1d3   : > { %492 = vmin.xlane.f32.xlu1 %v473_v52  ;;  %v471_v54 = vsel %vm469_vm1, %v409_v51, 1e+30 }
 0x1d5   : > { %486 = vmin.xlane.f32.xlu0 %v470_v53 }
 0x1d7   : > { %488 = vmin.xlane.f32.xlu1 %v471_v54  ;;  %v1331_v55 = vpop.f32.mrb[4].mxu0 }
 0x1d8   : > { %v422_v56 = vpop.f32.mrb[5].mxu0  ;;  %v476_v14 = vsel %vm469_vm1, %v1331_v55, 1e+30 }
 0x1d9   : > { %498 = vmin.xlane.f32.xlu0 %v476_v14  ;;  %v1332_v15 = vpop.f32.mrb[6].mxu0  ;;  %v1869_v21 = vsel %vm469_vm1, %v422_v56, 1e+30 }
 0x1da   : > { %v425_v16 = vpop.f32.mrb[7].mxu0  ;;  %v477_v20 = vsel %vm469_vm1, %v1332_v15, 1e+30 }
 0x1db   : > { %500 = vmin.xlane.f32.xlu1 %v477_v20  ;;  %v1874_v23 = vsel %vm469_vm1, %v425_v16, 1e+30 }
 0x1dd   : > { %494 = vmin.xlane.f32.xlu0 %v1869_v21 }
 0x1df   : > { %496 = vmin.xlane.f32.xlu1 %v1874_v23  ;;  %v1335_v24 = vpop.f32.mrb[8].mxu0 }
 0x1e0   : > { %v438_v27 = vpop.f32.mrb[9].mxu0  ;;  %v1879_v28 = vsel %vm469_vm1, %v1335_v24, 1e+30 }
 0x1e1   : > { %506 = vmin.xlane.f32.xlu0 %v1879_v28  ;;  %v1336_v31 = vpop.f32.mrb[10].mxu0  ;;  %v1889_v36 = vsel %vm469_vm1, %v438_v27, 1e+30 }
 0x1e2   : > { %v441_v32 = vpop.f32.mrb[11].mxu0  ;;  %v1884_v35 = vsel %vm469_vm1, %v1336_v31, 1e+30 }
 0x1e3   : > { %508 = vmin.xlane.f32.xlu1 %v1884_v35  ;;  %v1894_v39 = vsel %vm469_vm1, %v441_v32, 1e+30 }
 0x1e5   : > { %502 = vmin.xlane.f32.xlu0 %v1889_v36 }
 0x1e7   : > { %504 = vmin.xlane.f32.xlu1 %v1894_v39  ;;  %v1339_v40 = vpop.f32.mrb[12].mxu0 }
 0x1e8   : > { %v454_v43 = vpop.f32.mrb[13].mxu0  ;;  %v1909_v57 = vsel %vm469_vm1, %v1339_v40, 1e+30 }
 0x1e9   : > { %v1340_v44 = vpop.f32.mrb[14].mxu0  ;;  %v1899_v47 = vsel %vm469_vm1, %v454_v43, 1e+30 }
 0x1ea   : > { %510 = vmin.xlane.f32.xlu0 %v1899_v47  ;;  %v457_v48 = vpop.f32.mrb[15].mxu0  ;;  %v1914_v59 = vsel %vm469_vm1, %v1340_v44, 1e+30 }
 0x1eb   : > { %v1904_v49 = vsel %vm469_vm1, %v457_v48, 1e+30 }
 0x1ec   : > { %512 = vmin.xlane.f32.xlu1 %v1904_v49 }
 0x1ee   : > { %514 = vmin.xlane.f32.xlu0 %v1909_v57 }
 0x1f0   : > { %516 = vmin.xlane.f32.xlu1 %v1914_v59 }
 0x25e   : > { %v491_v60 = vpop.xlane.xlu0 %490 }
 0x25f   : > { %vm520_vm2 = vcmp.le.f32.partialorder %v472_v13, %v491_v60 }
 0x260   : > { %v1918_v61 = vsel %vm520_vm2, %v1796_v58, 128  ;;  %v493_v62 = vpop.xlane.xlu1 %492 }
 0x261   : > { %vm521_vm3 = vcmp.le.f32.partialorder %v473_v52, %v493_v62  ;;  %v579_v63 = vshra.s32 %v1918_v61, 16 }
 0x262   : > { %v1922_v0 = vsel %vm521_vm3, %v1796_v58, 128  ;;  %v487_v1 = vpop.xlane.xlu0 %486 }
 0x263   : > { %vm518_vm4 = vcmp.le.f32.partialorder %v470_v53, %v487_v1  ;;  %v1924_v2 = vcvt.s32.f32 %v579_v63  ;;  %v593_v3 = vshra.s32 %v1922_v0, 16 }
 0x264   : > { %v1928_v4 = vsel %vm518_vm4, %v1796_v58, 128  ;;  %v489_v5 = vpop.xlane.xlu1 %488 }
 0x265   : > { %vm519_vm5 = vcmp.le.f32.partialorder %v471_v54, %v489_v5  ;;  %582 = vmin.xlane.f32.xlu0 %v1924_v2  ;;  %v1931_v6 = vcvt.s32.f32 %v593_v3  ;;  %v551_v7 = vshra.s32 %v1928_v4, 16 }
 0x266   : > { %v1935_v8 = vsel %vm519_vm5, %v1796_v58, 128  ;;  %v499_v9 = vpop.xlane.xlu0 %498 }
 0x267   : > { %vm524_vm6 = vcmp.le.f32.partialorder %v476_v14, %v499_v9  ;;  %596 = vmin.xlane.f32.xlu1 %v1931_v6  ;;  %v1938_v10 = vcvt.s32.f32 %v551_v7  ;;  %v565_v11 = vshra.s32 %v1935_v8, 16 }
 0x268   : > { %v1942_v12 = vsel %vm524_vm6, %v1796_v58, 128  ;;  %v501_v13 = vpop.xlane.xlu1 %500 }
 0x269   : > { %vm525_vm7 = vcmp.le.f32.partialorder %v477_v20, %v501_v13  ;;  %554 = vmin.xlane.f32.xlu0 %v1938_v10  ;;  %v1945_v50 = vcvt.s32.f32 %v565_v11  ;;  %v635_v51 = vshra.s32 %v1942_v12, 16 }
 0x26a   : > { %v1949_v52 = vsel %vm525_vm7, %v1796_v58, 128  ;;  %v495_v53 = vpop.xlane.xlu0 %494 }
 0x26b   : > { %vm522_vm8 = vcmp.le.f32.partialorder %v1869_v21, %v495_v53  ;;  %568 = vmin.xlane.f32.xlu1 %v1945_v50  ;;  %v1953_v54 = vcvt.s32.f32 %v635_v51  ;;  %v649_v55 = vshra.s32 %v1949_v52, 16 }
 0x26c   : > { %v1957_v56 = vsel %vm522_vm8, %v1796_v58, 128  ;;  %v497_v14 = vpop.xlane.xlu1 %496 }
 0x26d   : > { %vm523_vm9 = vcmp.le.f32.partialorder %v1874_v23, %v497_v14  ;;  %638 = vmin.xlane.f32.xlu0 %v1953_v54  ;;  %v1961_v15 = vcvt.s32.f32 %v649_v55  ;;  %v607_v16 = vshra.s32 %v1957_v56, 16 }
 0x26e   : > { %v1965_v20 = vsel %vm523_vm9, %v1796_v58, 128  ;;  %v507_v21 = vpop.xlane.xlu0 %506 }
 0x26f   : > { %vm528_vm10 = vcmp.le.f32.partialorder %v1879_v28, %v507_v21  ;;  %652 = vmin.xlane.f32.xlu1 %v1961_v15  ;;  %v1969_v24 = vcvt.s32.f32 %v607_v16  ;;  %v621_v27 = vshra.s32 %v1965_v20, 16 }
 0x270   : > { %v1973_v23 = vsel %vm528_vm10, %v1796_v58, 128  ;;  %v509_v31 = vpop.xlane.xlu1 %508 }
 0x271   : > { %vm529_vm11 = vcmp.le.f32.partialorder %v1884_v35, %v509_v31  ;;  %610 = vmin.xlane.f32.xlu0 %v1969_v24  ;;  %v1977_v32 = vcvt.s32.f32 %v621_v27  ;;  %v691_v40 = vshra.s32 %v1973_v23, 16 }
 0x272   : > { %v1981_v28 = vsel %vm529_vm11, %v1796_v58, 128  ;;  %v503_v43 = vpop.xlane.xlu0 %502 }
 0x273   : > { %vm526_vm12 = vcmp.le.f32.partialorder %v1889_v36, %v503_v43  ;;  %624 = vmin.xlane.f32.xlu1 %v1977_v32  ;;  %v1985_v44 = vcvt.s32.f32 %v691_v40  ;;  %v705_v48 = vshra.s32 %v1981_v28, 16  ;;  %v592_v40 = vand.u32 65535, %v1922_v0 }
 0x274   : > { %v1989_v35 = vsel %vm526_vm12, %v1796_v58, 128  ;;  %v505_v60 = vpop.xlane.xlu1 %504  ;;  %v550_v43 = vand.u32 65535, %v1928_v4 }
 0x275   : > { %vm527_vm13 = vcmp.le.f32.partialorder %v1894_v39, %v505_v60  ;;  %694 = vmin.xlane.f32.xlu0 %v1985_v44  ;;  %v1993_v62 = vcvt.s32.f32 %v705_v48  ;;  %v663_v63 = vshra.s32 %v1989_v35, 16 }
 0x276   : > { %v1997_v36 = vsel %vm527_vm13, %v1796_v58, 128 }
 0x277   : > { %v511_v1 = vpop.xlane.xlu0 %510  ;;  %708 = vmin.xlane.f32.xlu1 %v1993_v62  ;;  %v2000_v3 = vcvt.s32.f32 %v663_v63  ;;  %v677_v5 = vshra.s32 %v1997_v36, 16  ;;  %v564_v63 = vand.u32 65535, %v1935_v8 }
 0x278   : > { %vm530_vm14 = vcmp.le.f32.partialorder %v1899_v47, %v511_v1 }
 0x279   : > { %v2005_v39 = vsel %vm530_vm14, %v1796_v58, 128  ;;  %666 = vmin.xlane.f32.xlu0 %v2000_v3  ;;  %v513_v7 = vpop.xlane.xlu1 %512  ;;  %v2008_v9 = vcvt.s32.f32 %v677_v5 }
 0x27a   : > { %vm531_vm15 = vcmp.le.f32.partialorder %v1904_v49, %v513_v7  ;;  %v719_v11 = vshra.s32 %v2005_v39, 16  ;;  %v594_v7 = vcvt.s32.f32 %v592_v40 }
 0x27b   : > { %v2013_v13 = vsel %vm531_vm15, %v1796_v58, 128  ;;  %v515_v51 = vpop.xlane.xlu0 %514  ;;  %680 = vmin.xlane.f32.xlu1 %v2008_v9 }
 0x27c   : > { %vm532_vm1 = vcmp.le.f32.partialorder %v1909_v57, %v515_v51  ;;  %v2017_v47 = vcvt.s32.f32 %v719_v11  ;;  %v733_v53 = vshra.s32 %v2013_v13, 16  ;;  %v552_v11 = vcvt.s32.f32 %v550_v43 }
 0x27d   : > { %v2021_v55 = vsel %vm532_vm1, %v1796_v58, 128  ;;  %v517_v14 = vpop.xlane.xlu1 %516 }
 0x27e   : > { %vm533_vm2 = vcmp.le.f32.partialorder %v1914_v59, %v517_v14  ;;  %722 = vmin.xlane.f32.xlu0 %v2017_v47  ;;  %v2025_v49 = vcvt.s32.f32 %v733_v53  ;;  %v747_v16 = vshra.s32 %v2021_v55, 16  ;;  %v578_v59 = vand.u32 65535, %v1918_v61 }
 0x27f   : > { %v2029_v21 = vsel %vm533_vm2, %v1796_v58, 128  ;;  %v634_v61 = vand.u32 65535, %v1942_v12  ;;  %v566_v53 = vcvt.s32.f32 %v564_v63 }
 0x280   : > { %736 = vmin.xlane.f32.xlu1 %v2025_v49  ;;  %v2032_v57 = vcvt.s32.f32 %v747_v16  ;;  %v761_v27 = vshra.s32 %v2029_v21, 16  ;;  %v580_v60 = vcvt.s32.f32 %v578_v59 }
 0x281   : > { %v636_v16 = vcvt.s32.f32 %v634_v61 }
 0x282   : > { %750 = vmin.xlane.f32.xlu0 %v2032_v57  ;;  %v2036_v31 = vcvt.s32.f32 %v761_v27 }
 0x284   : > { %764 = vmin.xlane.f32.xlu1 %v2036_v31 }
 0x2f2   : > { %v2042_v48 = vpop.xlane.xlu0 %582 }
 0x2f3   : > { %vm584_vm3 = vcmp.eq.f32.partialorder %v1924_v2, %v2042_v48  ;;  %v648_v2 = vand.u32 65535, %v1949_v52 }
 0x2f4   : > { %v2047_v1 = vpop.xlane.xlu1 %596  ;;  %v585_v5 = vsel %vm584_vm3, %v580_v60, inf }
 0x2f5   : > { %586 = vmin.xlane.f32.xlu0 %v585_v5  ;;  %vm598_vm4 = vcmp.eq.f32.partialorder %v1931_v6, %v2047_v1  ;;  %v606_v6 = vand.u32 65535, %v1957_v56  ;;  %v650_v59 = vcvt.s32.f32 %v648_v2  ;;  %v718_v2 = vand.u32 65535, %v2005_v39 }
 0x2f6   : > { %v2052_v0 = vpop.xlane.xlu0 %554  ;;  %v599_v4 = vsel %vm598_vm4, %v594_v7, inf }
 0x2f7   : > { %600 = vmin.xlane.f32.xlu1 %v599_v4  ;;  %vm556_vm5 = vcmp.eq.f32.partialorder %v1938_v10, %v2052_v0  ;;  %v620_v10 = vand.u32 65535, %v1965_v20  ;;  %v608_v43 = vcvt.s32.f32 %v606_v6  ;;  %v746_v6 = vand.u32 65535, %v2021_v55 }
 0x2f8   : > { %v2057_v8 = vpop.xlane.xlu1 %568  ;;  %v557_v51 = vsel %vm556_vm5, %v552_v11, inf  ;;  %v720_v39 = vcvt.s32.f32 %v718_v2 }
 0x2f9   : > { %558 = vmin.xlane.f32.xlu0 %v557_v51  ;;  %vm570_vm6 = vcmp.eq.f32.partialorder %v1945_v50, %v2057_v8  ;;  %v690_v50 = vand.u32 65535, %v1973_v23  ;;  %v622_v63 = vcvt.s32.f32 %v620_v10 }
 0x2fa   : > { %v2062_v12 = vpop.xlane.xlu0 %638  ;;  %v571_v14 = vsel %vm570_vm6, %v566_v53, inf  ;;  %v732_v53 = vand.u32 65535, %v2013_v13 }
 0x2fb   : > { %572 = vmin.xlane.f32.xlu1 %v571_v14  ;;  %vm640_vm7 = vcmp.eq.f32.partialorder %v1953_v54, %v2062_v12  ;;  %v704_v54 = vand.u32 65535, %v1981_v28  ;;  %v692_v7 = vcvt.s32.f32 %v690_v50 }
 0x2fc   : > { %v2067_v52 = vpop.xlane.xlu1 %652  ;;  %v641_v27 = vsel %vm640_vm7, %v636_v16, inf  ;;  %v734_v13 = vcvt.s32.f32 %v732_v53 }
 0x2fd   : > { %642 = vmin.xlane.f32.xlu0 %v641_v27  ;;  %vm654_vm8 = vcmp.eq.f32.partialorder %v1961_v15, %v2067_v52  ;;  %v662_v15 = vand.u32 65535, %v1989_v35  ;;  %v706_v4 = vcvt.s32.f32 %v704_v54  ;;  %v748_v27 = vcvt.s32.f32 %v746_v6 }
 0x2fe   : > { %v2072_v56 = vpop.xlane.xlu0 %610  ;;  %v655_v40 = vsel %vm654_vm8, %v650_v59, inf }
 0x2ff   : > { %656 = vmin.xlane.f32.xlu1 %v655_v40  ;;  %vm612_vm9 = vcmp.eq.f32.partialorder %v1969_v24, %v2072_v56  ;;  %v676_v24 = vand.u32 65535, %v1997_v36  ;;  %v664_v11 = vcvt.s32.f32 %v662_v15  ;;  %v603_v40 = vcvt.f32.s32 %v2047_v1 }
 0x300   : > { %v2077_v20 = vpop.xlane.xlu1 %624  ;;  %v613_v60 = vsel %vm612_vm9, %v608_v43, inf  ;;  %v561_v43 = vcvt.f32.s32 %v2052_v0  ;;  %v659_v0 = vcvt.f32.s32 %v2067_v52 }
 0x301   : > { %614 = vmin.xlane.f32.xlu0 %v613_v60  ;;  %vm626_vm10 = vcmp.eq.f32.partialorder %v1977_v32, %v2077_v20  ;;  %v678_v51 = vcvt.s32.f32 %v676_v24  ;;  %v631_v52 = vcvt.f32.s32 %v2077_v20 }
 0x302   : > { %v2082_v23 = vpop.xlane.xlu0 %694  ;;  %v627_v5 = vsel %vm626_vm10, %v622_v63, inf }
 0x303   : > { %628 = vmin.xlane.f32.xlu1 %v627_v5  ;;  %vm696_vm11 = vcmp.eq.f32.partialorder %v1985_v44, %v2082_v23  ;;  %v604_v5 = vshll.u32 %v603_v40, 16  ;;  %v632_v20 = vshll.u32 %v631_v52, 16 }
 0x304   : > { %v2087_v28 = vpop.xlane.xlu1 %708  ;;  %v697_v61 = vsel %vm696_vm11, %v692_v7, inf }
 0x305   : > { %698 = vmin.xlane.f32.xlu0 %v697_v61  ;;  %vm710_vm12 = vcmp.eq.f32.partialorder %v1993_v62, %v2087_v28  ;;  %v562_v61 = vshll.u32 %v561_v43, 16 }
 0x306   : > { %v2091_v32 = vpop.xlane.xlu0 %666  ;;  %v711_v35 = vsel %vm710_vm12, %v706_v4, inf }
 0x307   : > { %712 = vmin.xlane.f32.xlu1 %v711_v35  ;;  %vm668_vm13 = vcmp.eq.f32.partialorder %v2000_v3, %v2091_v32  ;;  %v760_v3 = vand.u32 65535, %v2029_v21 }
 0x308   : > { %v2096_v44 = vpop.xlane.xlu1 %680  ;;  %v669_v36 = vsel %vm668_vm13, %v664_v11, inf }
 0x309   : > { %670 = vmin.xlane.f32.xlu0 %v669_v36  ;;  %vm682_vm14 = vcmp.eq.f32.partialorder %v2008_v9, %v2096_v44  ;;  %v762_v21 = vcvt.s32.f32 %v760_v3 }
 0x30a   : > { %v683_v62 = vsel %vm682_vm14, %v678_v51, inf  ;;  %v617_v51 = vcvt.f32.s32 %v2072_v56 }
 0x30b   : > { %v2102_v14 = vpop.xlane.xlu0 %722  ;;  %684 = vmin.xlane.f32.xlu1 %v683_v62  ;;  %v1496_v62 = vmov 0.0  }
 0x30c   : > { %vm724_vm15 = vcmp.eq.f32.partialorder %v2017_v47, %v2102_v14  ;;  %v618_v56 = vshll.u32 %v617_v51, 16 }
 0x30d   : > { %v2107_v16 = vpop.xlane.xlu1 %736  ;;  %v725_v10 = vsel %vm724_vm15, %v720_v39, inf }
 0x30e   : > { %726 = vmin.xlane.f32.xlu0 %v725_v10  ;;  %vm738_vm1 = vcmp.eq.f32.partialorder %v2025_v49, %v2107_v16  ;;  %v589_v49 = vcvt.f32.s32 %v2042_v48  ;;  %v743_v52 = vcvt.f32.s32 %v2107_v16 }
 0x30f   : > { %v2111_v9 = vpop.xlane.xlu0 %750  ;;  %v739_v55 = vsel %vm738_vm1, %v734_v13, inf }
 0x310   : > { %740 = vmin.xlane.f32.xlu1 %v739_v55  ;;  %vm752_vm2 = vcmp.eq.f32.partialorder %v2032_v57, %v2111_v9  ;;  %v590_v60 = vshll.u32 %v589_v49, 16  ;;  %v575_v57 = vcvt.f32.s32 %v2057_v8  ;;  %v660_v55 = vshll.u32 %v659_v0, 16 }
 0x311   : > { %v2115_v59 = vpop.xlane.xlu1 %764  ;;  %v753_v47 = vsel %vm752_vm2, %v748_v27, inf }
 0x312   : > { %754 = vmin.xlane.f32.xlu0 %v753_v47  ;;  %vm766_vm3 = vcmp.eq.f32.partialorder %v2036_v31, %v2115_v59  ;;  %v645_v31 = vcvt.f32.s32 %v2062_v12  ;;  %v576_v1 = vshll.u32 %v575_v57, 16  ;;  %v715_v57 = vcvt.f32.s32 %v2087_v28 }
 0x313   : > { %v767_v50 = vsel %vm766_vm3, %v762_v21, inf  ;;  %v701_v21 = vcvt.f32.s32 %v2082_v23  ;;  %v687_v28 = vcvt.f32.s32 %v2096_v44  ;;  %v729_v44 = vcvt.f32.s32 %v2102_v14 }
 0x314   : > { %768 = vmin.xlane.f32.xlu1 %v767_v50  ;;  %v646_v36 = vshll.u32 %v645_v31, 16  ;;  %v744_v14 = vshll.u32 %v743_v52, 16  ;;  %v771_v16 = vcvt.f32.s32 %v2115_v59 }
 0x315   : > { %v702_v23 = vshll.u32 %v701_v21, 16 }
 0x316   : > { %v772_v59 = vshll.u32 %v771_v16, 16 }
 0x382   : > { %v587_v54 = vpop.xlane.xlu0 %586 }
 0x383   : > { %v588_v63 = vcvt.f32.s32 %v587_v54 }
 0x384   : > { %v601_v15 = vpop.xlane.xlu1 %600 }
 0x385   : > { %v591_v7 = vadd.s32 %v590_v60, %v588_v63  ;;  %v602_v24 = vcvt.f32.s32 %v601_v15 }
 0x386   : > { %v559_v4 = vpop.xlane.xlu0 %558 }
 0x387   : > { %vm776_vm4 = vcmp.eq.s32.totalorder %v1796_v58, %v591_v7  ;;  %v605_v48 = vadd.s32 %v604_v5, %v602_v24  ;;  %v560_v35 = vcvt.f32.s32 %v559_v4  ;;  %v673_v7 = vcvt.f32.s32 %v2091_v32 }
 0x388   : > { %v573_v11 = vpop.xlane.xlu1 %572  ;;  %v1260_v12 = vsel %vm776_vm4, 1.0, %v1496_v62 }
 0x389   : > { %vm777_vm5 = vcmp.eq.s32.totalorder %v1796_v58, %v605_v48  ;;  %v563_v2 = vadd.s32 %v562_v61, %v560_v35  ;;  %v574_v8 = vcvt.f32.s32 %v573_v11  ;;  %v716_v11 = vshll.u32 %v715_v57, 16 }
 0x38a   : > { %v643_v53 = vpop.xlane.xlu0 %642  ;;  %v1261_v6 = vsel %vm777_vm5, 1.0, %v1496_v62  ;;  %v674_v32 = vshll.u32 %v673_v7, 16 }
 0x38b   : > { %v577_v39 = vadd.s32 %v576_v1, %v574_v8  ;;  %v644_v3 = vcvt.f32.s32 %v643_v53  ;;  %vm774_vm6 = vcmp.eq.s32.totalorder %v1796_v58, %v563_v2  ;;  %v823_v10 = vpack.c.bf16 %v1261_v6, %v1260_v12 }
 0x38c   : > { %v657_v13 = vpop.xlane.xlu1 %656  ;;  %v1258_v49 = vsel %vm774_vm6, 1.0, %v1496_v62 }
 0x38d   : > { %v647_v27 = vadd.s32 %v646_v36, %v644_v3  ;;  %v658_v47 = vcvt.f32.s32 %v657_v13  ;;  %vm775_vm7 = vcmp.eq.s32.totalorder %v1796_v58, %v577_v39  ;;  %v688_v39 = vshll.u32 %v687_v28, 16 }
 0x38e   : > { %v615_v50 = vpop.xlane.xlu0 %614  ;;  %v1259_v40 = vsel %vm775_vm7, 1.0, %v1496_v62 }
 0x38f   : > { %vm780_vm8 = vcmp.eq.s32.totalorder %v1796_v58, %v647_v27  ;;  %v661_v43 = vadd.s32 %v660_v55, %v658_v47  ;;  %v616_v54 = vcvt.f32.s32 %v615_v50  ;;  %v822_v60 = vpack.c.bf16 %v1259_v40, %v1258_v49 }
 0x390   : > { %v629_v63 = vpop.xlane.xlu1 %628  ;;  %v1264_v61 = vsel %vm780_vm8, 1.0, %v1496_v62  ;;  %v730_v50 = vshll.u32 %v729_v44, 16  ;;  %v757_v40 = vcvt.f32.s32 %v2111_v9  ;;  %v833_v44 = vld [vmem:[#allocation2 + $0x18] sm:$0xff] }
 0x391   : > { %vm781_vm9 = vcmp.eq.s32.totalorder %v1796_v58, %v661_v43  ;;  %v619_v15 = vadd.s32 %v618_v56, %v616_v54  ;;  %v630_v5 = vcvt.f32.s32 %v629_v63  ;;  %846 = vxpose.xlu0.c.b16.start [1/8] %v822_v60, 128 }
 0x392   : > { %v699_v24 = vpop.xlane.xlu0 %698  ;;  %v1265_v31 = vsel %vm781_vm9, 1.0, %v1496_v62  ;;  %v758_v7 = vshll.u32 %v757_v40, 16 }
 0x393   : > { %vm778_vm10 = vcmp.eq.s32.totalorder %v1796_v58, %v619_v15  ;;  %v633_v4 = vadd.s32 %v632_v20, %v630_v5  ;;  %v700_v48 = vcvt.f32.s32 %v699_v24  ;;  %v825_v35 = vpack.c.bf16 %v1265_v31, %v1264_v61 }
 0x394   : > { %v713_v1 = vpop.xlane.xlu1 %712  ;;  %v1262_v36 = vsel %vm778_vm10, 1.0, %v1496_v62 }
 0x395   : > { %vm779_vm11 = vcmp.eq.s32.totalorder %v1796_v58, %v633_v4  ;;  %v703_v0 = vadd.s32 %v702_v23, %v700_v48  ;;  %v714_v2 = vcvt.f32.s32 %v713_v1  ;;  %847 = vxpose.xlu0.c.b16.cont [2/8] %v823_v10, 128 }
 0x396   : > { %v671_v8 = vpop.xlane.xlu0 %670  ;;  %v1263_v51 = vsel %vm779_vm11, 1.0, %v1496_v62 }
 0x397   : > { %vm784_vm12 = vcmp.eq.s32.totalorder %v1796_v58, %v703_v0  ;;  %v717_v53 = vadd.s32 %v716_v11, %v714_v2  ;;  %v672_v12 = vcvt.f32.s32 %v671_v8  ;;  %v824_v6 = vpack.c.bf16 %v1263_v51, %v1262_v36 }
 0x398   : > { %v685_v3 = vpop.xlane.xlu1 %684  ;;  %v1268_v55 = vsel %vm784_vm12, 1.0, %v1496_v62 }
 0x399   : > { %vm785_vm13 = vcmp.eq.s32.totalorder %v1796_v58, %v717_v53  ;;  %v675_v10 = vadd.s32 %v674_v32, %v672_v12  ;;  %v686_v13 = vcvt.f32.s32 %v685_v3  ;;  %848 = vxpose.xlu0.c.b16.cont [3/8] %v824_v6, 128  ;;  %v832_v6 = vld [vmem:[#allocation2 + $0x10] sm:$0xff] }
 0x39a   : > { %v1269_v27 = vsel %vm785_vm13, 1.0, %v1496_v62 }
 0x39b   : > { %vm782_vm14 = vcmp.eq.s32.totalorder %v1796_v58, %v675_v10  ;;  %v689_v47 = vadd.s32 %v688_v39, %v686_v13  ;;  %v727_v56 = vpop.xlane.xlu0 %726  ;;  %v827_v21 = vpack.c.bf16 %v1269_v27, %v1268_v55  ;;  %v831_v10 = vld [vmem:[#allocation2 + $0x8] sm:$0xff] }
 0x39c   : > { %v728_v49 = vcvt.f32.s32 %v727_v56  ;;  %v1266_v20 = vsel %vm782_vm14, 1.0, %v1496_v62 }
 0x39d   : > { %vm783_vm15 = vcmp.eq.s32.totalorder %v1796_v58, %v689_v47  ;;  %849 = vxpose.xlu0.c.b16.cont [4/8] %v825_v35, 128  ;;  %v741_v43 = vpop.xlane.xlu1 %740 }
 0x39e   : > { %v731_v54 = vadd.s32 %v730_v50, %v728_v49  ;;  %v742_v60 = vcvt.f32.s32 %v741_v43  ;;  %v1267_v63 = vsel %vm783_vm15, 1.0, %v1496_v62  ;;  %v834_v50 = vld [vmem:[#allocation2 + $0x20] sm:$0xff]  ;;  %v835_v43 = vld [vmem:[#allocation2 + $0x28] sm:$0xff] }
 0x39f   : > { %v755_v57 = vpop.xlane.xlu0 %754  ;;  %v826_v15 = vpack.c.bf16 %v1267_v63, %v1266_v20 }
 0x3a0   : > { %vm786_vm1 = vcmp.eq.s32.totalorder %v1796_v58, %v731_v54  ;;  %v745_v5 = vadd.s32 %v744_v14, %v742_v60  ;;  %v756_v23 = vcvt.f32.s32 %v755_v57  ;;  %v837_v14 = vld [vmem:[#allocation2 + $0x38] sm:$0xff] }
 0x3a1   : > { %850 = vxpose.xlu0.c.b16.cont [5/8] %v826_v15, 128  ;;  %v769_v9 = vpop.xlane.xlu1 %768  ;;  %v1270_v31 = vsel %vm786_vm1, 1.0, %v1496_v62  ;;  %v840_v15 = vld [vmem:[#allocation2 + $0x50] sm:$0xff] }
 0x3a2   : > { %vm787_vm2 = vcmp.eq.s32.totalorder %v1796_v58, %v745_v5  ;;  %v770_v24 = vcvt.f32.s32 %v769_v9  ;;  %v759_v61 = vadd.s32 %v758_v7, %v756_v23  ;;  %v838_v5 = vld [vmem:[#allocation2 + $0x40] sm:$0xff]  ;;  %v841_v7 = vld [vmem:[#allocation2 + $0x58] sm:$0xff] }
 0x3a3   : > { %v1271_v4 = vsel %vm787_vm2, 1.0, %v1496_v62 }
 0x3a4   : > { %v773_v48 = vadd.s32 %v772_v59, %v770_v24  ;;  %v828_v35 = vpack.c.bf16 %v1271_v4, %v1270_v31  ;;  %vm788_vm4 = vcmp.eq.s32.totalorder %v1796_v58, %v759_v61  ;;  %v839_v24 = vld [vmem:[#allocation2 + $0x48] sm:$0xff] }
 0x3a5   : > { %851 = vxpose.xlu0.c.b16.cont [6/8] %v827_v21, 128  ;;  %v1272_v1 = vsel %vm788_vm4, 1.0, %v1496_v62  ;;  %v836_v21 = vld [vmem:[#allocation2 + $0x30] sm:$0xff] }
 0x3a6   : > { %vm789_vm3 = vcmp.eq.s32.totalorder %v1796_v58, %v773_v48 }
 0x3a7   : > { %v1273_v28 = vsel %vm789_vm3, 1.0, %v1496_v62  ;;  %v830_v62 = vld [vmem:[#allocation2] sm:$0xff] }
 0x3a8   : > { %v829_v11 = vpack.c.bf16 %v1273_v28, %v1272_v1  ;;  %v844_v28 = vld [vmem:[#allocation2 + $0x70] sm:$0xff]  ;;  %v842_v1 = vld [vmem:[#allocation2 + $0x60] sm:$0xff] }
 0x3a9   : > { %852 = vxpose.xlu0.c.b16.cont [7/8] %v828_v35, 128 }
 0x3ad   : > { %853 = vxpose.xlu0.c.b16.end [8/8] %v829_v11, 128 }
 0x3f7   : > { %v854_v0 = vpop.trf.xlu0 }
 0x3f8   : > { %1357 = vmatprep.mubr.bf16.mxu1 %v854_v0  ;;  %v845_v0 = vld [vmem:[#allocation2 + $0x78] sm:$0xff] }
 0x3fb   : > { %v855_v2 = vpop.trf.xlu0 }
 0x3fc   : > { %1358 = vmatmul.mubr.bf16.vlgmr.msra.gmra.mrb[0].mxu1 %v855_v2 }
 0x3ff   : > { %v856_v32 = vpop.trf.xlu0 }
 0x400   : > { %1361 = vmatprep.mubr.bf16.mxu1 %v856_v32 }
 0x403   : > { %v857_v8 = vpop.trf.xlu0 }
 0x404   : > { %1362 = vmatmul.mubr.bf16.gmra.mrb[4].mxu1 %v857_v8  ;;  %v843_v8 = vld [vmem:[#allocation2 + $0x68] sm:$0xff] }
 0x407   : > { %v858_v36 = vpop.trf.xlu0 }
 0x408   : > { %1365 = vmatprep.mubr.bf16.mxu1 %v858_v36 }
 0x40b   : > { %v859_v51 = vpop.trf.xlu0 }
 0x40c   : > { %1366 = vmatmul.mubr.bf16.gmra.mrb[8].mxu1 %v859_v51 }
 0x40f   : > { %v860_v53 = vpop.trf.xlu0 }
 0x410   : > { %1369 = vmatprep.mubr.bf16.mxu1 %v860_v53 }
 0x413   : > { %v861_v12 = vpop.trf.xlu0 }
 0x414   : > { %1370 = vmatmul.mubr.bf16.gmra.mrb[12].mxu1 %v861_v12 }
 0x4cf   : > { %v1359_v39 = vpop.f32.mrb[0].mxu1 }
 0x4d0   : > { %v961_v3 = vadd.f32 %v1359_v39, %v832_v6  ;;  %v896_v52 = vpop.f32.mrb[1].mxu1 }
 0x4d1   : > { %v959_v13 = vadd.f32 %v896_v52, %v830_v62  ;;  %v1360_v55 = vpop.f32.mrb[2].mxu1 }
 0x4d2   : > { %977 = vst [vmem:[#allocation2 + $0x10] sm:$0xff] %v961_v3  ;;  %v962_v27 = vadd.f32 %v1360_v55, %v833_v44  ;;  %v899_v47 = vpop.f32.mrb[3].mxu1 }
 0x4d3   : > { %975 = vst [vmem:[#allocation2] sm:$0xff] %v959_v13  ;;  %v960_v56 = vadd.f32 %v899_v47, %v831_v10 }
 0x4d4   : > { %978 = vst [vmem:[#allocation2 + $0x18] sm:$0xff] %v962_v27 }
 0x4d5   : > { %976 = vst [vmem:[#allocation2 + $0x8] sm:$0xff] %v960_v56 }
 0x4d7   : > { %v1363_v49 = vpop.f32.mrb[4].mxu1 }
 0x4d8   : > { %v965_v40 = vadd.f32 %v1363_v49, %v836_v21  ;;  %v912_v16 = vpop.f32.mrb[5].mxu1 }
 0x4d9   : > { %v963_v54 = vadd.f32 %v912_v16, %v834_v50  ;;  %v1364_v60 = vpop.f32.mrb[6].mxu1  ;;  %v2168_v62 = vld [vmem:[#allocation2 + $0x10] sm:$0xff] (!%p1274_p10) }
 0x4da   : > { %981 = vst [vmem:[#allocation2 + $0x30] sm:$0xff] %v965_v40  ;;  %v966_v20 = vadd.f32 %v1364_v60, %v837_v14  ;;  %v915_v63 = vpop.f32.mrb[7].mxu1  ;;  %v2170_v39 = vld [vmem:[#allocation2] sm:$0xff] (!%p1274_p10)  ;;  %v1013_v3 = vsel (!%p1274_p10), %vm283_vm0, %v2168_v62, 0.0 }
 0x4db   : > { %979 = vst [vmem:[#allocation2 + $0x20] sm:$0xff] %v963_v54  ;;  %v964_v57 = vadd.f32 %v915_v63, %v835_v43  ;;  %v2172_v44 = vld [vmem:[#allocation2 + $0x18] sm:$0xff] (!%p1274_p10)  ;;  %v1011_v52 = vsel (!%p1274_p10), %vm283_vm0, %v2170_v39, 0.0  ;;  %1031 = vadd.xlane.f32.xlu1 (!%p1274_p10), %v1013_v3 }
 0x4dc   : > { %982 = vst [vmem:[#allocation2 + $0x38] sm:$0xff] %v966_v20  ;;  %v2180_v10 = vld [vmem:[#allocation2 + $0x8] sm:$0xff] (!%p1274_p10)  ;;  %1027 = vadd.xlane.f32.xlu0 (!%p1274_p10), %v1011_v52  ;;  %v1014_v13 = vsel (!%p1274_p10), %vm283_vm0, %v2172_v44, 0.0 }
 0x4dd   : > { %980 = vst [vmem:[#allocation2 + $0x28] sm:$0xff] %v964_v57  ;;  %v1012_v55 = vsel (!%p1274_p10), %vm283_vm0, %v2180_v10, 0.0 }
 0x4df   : > { %v1367_v23 = vpop.f32.mrb[8].mxu1  ;;  %1033 = vadd.xlane.f32.xlu1 (!%p1274_p10), %v1014_v13 }
 0x4e0   : > { %v969_v9 = vadd.f32 %v1367_v23, %v840_v15  ;;  %v928_v59 = vpop.f32.mrb[9].mxu1  ;;  %1029 = vadd.xlane.f32.xlu0 (!%p1274_p10), %v1012_v55 }
 0x4e1   : > { %v967_v61 = vadd.f32 %v928_v59, %v838_v5  ;;  %v1368_v31 = vpop.f32.mrb[10].mxu1  ;;  %v2200_v49 = vld [vmem:[#allocation2 + $0x30] sm:$0xff] (!%p1274_p10) }
 0x4e2   : > { %985 = vst [vmem:[#allocation2 + $0x50] sm:$0xff] %v969_v9  ;;  %v970_v4 = vadd.f32 %v1368_v31, %v841_v7  ;;  %v931_v48 = vpop.f32.mrb[11].mxu1  ;;  %v2190_v47 = vld [vmem:[#allocation2 + $0x20] sm:$0xff] (!%p1274_p10)  ;;  %v1017_v40 = vsel (!%p1274_p10), %vm283_vm0, %v2200_v49, 0.0 }
 0x4e3   : > { %983 = vst [vmem:[#allocation2 + $0x40] sm:$0xff] %v967_v61  ;;  %v968_v35 = vadd.f32 %v931_v48, %v839_v24  ;;  %v1015_v21 = vsel (!%p1274_p10), %vm283_vm0, %v2190_v47, 0.0  ;;  %v2198_v50 = vld [vmem:[#allocation2 + $0x38] sm:$0xff] (!%p1274_p10) }
 0x4e4   : > { %986 = vst [vmem:[#allocation2 + $0x58] sm:$0xff] %v970_v4  ;;  %v2188_v27 = vld [vmem:[#allocation2 + $0x28] sm:$0xff] (!%p1274_p10)  ;;  %1035 = vadd.xlane.f32.xlu0 (!%p1274_p10), %v1015_v21  ;;  %v1018_v14 = vsel (!%p1274_p10), %vm283_vm0, %v2198_v50, 0.0 }
 0x4e5   : > { %984 = vst [vmem:[#allocation2 + $0x48] sm:$0xff] %v968_v35  ;;  %v1016_v56 = vsel (!%p1274_p10), %vm283_vm0, %v2188_v27, 0.0 }
 0x4e6   : > { %1037 = vadd.xlane.f32.xlu1 (!%p1274_p10), %v1016_v56 }
 0x4e7   : > { %v1371_v11 = vpop.f32.mrb[12].mxu1  ;;  %994 = sbr.rel (%p1274_p10) target bundleno = 1435 (0x59b), region = 40 }
 0x4e8   : > { %v973_v2 = vadd.f32 %v1371_v11, %v844_v28  ;;  %v944_v32 = vpop.f32.mrb[13].mxu1  ;;  %1039 = vadd.xlane.f32.xlu0 (!%p1274_p10), %v1017_v40 }
 0x4e9   : > { %v971_v36 = vadd.f32 %v944_v32, %v842_v1  ;;  %v1372_v51 = vpop.f32.mrb[14].mxu1  ;;  %v2220_v63 = vld [vmem:[#allocation2 + $0x50] sm:$0xff] (!%p1274_p10) }
 0x4ea   : > { %989 = vst [vmem:[#allocation2 + $0x70] sm:$0xff] %v973_v2  ;;  %v974_v53 = vadd.f32 %v1372_v51, %v845_v0  ;;  %v947_v12 = vpop.f32.mrb[15].mxu1  ;;  %v2210_v43 = vld [vmem:[#allocation2 + $0x40] sm:$0xff] (!%p1274_p10)  ;;  %1041 = vadd.xlane.f32.xlu1 (!%p1274_p10), %v1018_v14  ;;  %v1021_v15 = vsel (!%p1274_p10), %vm283_vm0, %v2220_v63, 0.0 }
 0x4eb   : > { %987 = vst [vmem:[#allocation2 + $0x60] sm:$0xff] %v971_v36  ;;  %v972_v6 = vadd.f32 %v947_v12, %v843_v8  ;;  %v1019_v60 = vsel (!%p1274_p10), %vm283_vm0, %v2210_v43, 0.0  ;;  %v2218_v20 = vld [vmem:[#allocation2 + $0x58] sm:$0xff] (!%p1274_p10) }
 0x4ec   : > { %990 = vst [vmem:[#allocation2 + $0x78] sm:$0xff] %v974_v53  ;;  %v2208_v16 = vld [vmem:[#allocation2 + $0x48] sm:$0xff] (!%p1274_p10)  ;;  %1043 = vadd.xlane.f32.xlu0 (!%p1274_p10), %v1019_v60  ;;  %v1022_v57 = vsel (!%p1274_p10), %vm283_vm0, %v2218_v20, 0.0 }
 0x4ed   : > { %988 = vst [vmem:[#allocation2 + $0x68] sm:$0xff] %v972_v6  ;;  %v1020_v54 = vsel (!%p1274_p10), %vm283_vm0, %v2208_v16, 0.0 }
 0x4ee   : > { %1045 = vadd.xlane.f32.xlu1 %v1020_v54 }
 0x4f0   : > { %1047 = vadd.xlane.f32.xlu0 %v1021_v15 }
 0x4f1   : > { %v2240_v24 = vld [vmem:[#allocation2 + $0x70] sm:$0xff] }
 0x4f2   : > { %v2230_v23 = vld [vmem:[#allocation2 + $0x60] sm:$0xff]  ;;  %1049 = vadd.xlane.f32.xlu1 %v1022_v57  ;;  %v1025_v31 = vsel %vm283_vm0, %v2240_v24, 0.0 }
 0x4f3   : > { %v1023_v9 = vsel %vm283_vm0, %v2230_v23, 0.0  ;;  %v2238_v59 = vld [vmem:[#allocation2 + $0x78] sm:$0xff] }
 0x4f4   : > { %v2228_v5 = vld [vmem:[#allocation2 + $0x68] sm:$0xff]  ;;  %1051 = vadd.xlane.f32.xlu0 %v1023_v9  ;;  %v1026_v61 = vsel %vm283_vm0, %v2238_v59, 0.0 }
 0x4f5   : > { %v1024_v7 = vsel %vm283_vm0, %v2228_v5, 0.0  ;;  %vm1171_vm0 = vcmp.lt.s32.totalorder %v1796_v58, 32 }
 0x4f6   : > { %1053 = vadd.xlane.f32.xlu1 %v1024_v7 }
 0x4f8   : > { %1055 = vadd.xlane.f32.xlu0 %v1025_v31 }
 0x4fa   : > { %1057 = vadd.xlane.f32.xlu1 %v1026_v61 }
 0x568   : > { %v1032_v4 = vpop.xlane.xlu1 %1031 }
 0x569   : > { %v1028_v48 = vpop.xlane.xlu0 %1027  ;;  %v1077_v35 = vmax.f32 %v1032_v4, 1.0  ;;  %vm1061_vm5 = vcmp.gt.f32.partialorder %v1032_v4, 0.0 }
 0x56a   : > { %v1075_v28 = vmax.f32 %v1028_v48, 1.0  ;;  %vm1059_vm6 = vcmp.gt.f32.partialorder %v1028_v48, 0.0 }
 0x56b   : > { %1423 = vrcp.f32 %v1077_v35 }
 0x56c   : > { %1425 = vrcp.f32 %v1075_v28  ;;  %v1034_v1 = vpop.xlane.xlu1 %1033 }
 0x56d   : > { %v1030_v11 = vpop.xlane.xlu0 %1029  ;;  %v1078_v0 = vmax.f32 %v1034_v1, 1.0  ;;  %vm1062_vm7 = vcmp.gt.f32.partialorder %v1034_v1, 0.0 }
 0x56e   : > { %v1076_v2 = vmax.f32 %v1030_v11, 1.0  ;;  %vm1060_vm8 = vcmp.gt.f32.partialorder %v1030_v11, 0.0 }
 0x56f   : > { %1427 = vrcp.f32 %v1078_v0 }
 0x570   : > { %1429 = vrcp.f32 %v1076_v2 }
 0x571   : > { %v1036_v8 = vpop.xlane.xlu0 %1035 }
 0x572   : > { %v1079_v51 = vmax.f32 %v1036_v8, 1.0  ;;  %vm1063_vm10 = vcmp.gt.f32.partialorder %v1036_v8, 0.0 }
 0x573   : > { %v1038_v32 = vpop.xlane.xlu1 %1037 }
 0x574   : > { %v1080_v36 = vmax.f32 %v1038_v32, 1.0  ;;  %vm1064_vm9 = vcmp.gt.f32.partialorder %v1038_v32, 0.0 }
 0x575   : > { %v2250_v12 = vpop.xlane.xlu0 %1039  ;;  %v1424_v6 = vpop.eup %1423 }
 0x576   : > { %1431 = vrcp.f32 %v1080_v36  ;;  %v1081_v52 = vmax.f32 %v2250_v12, 1.0  ;;  %v1426_v13 = vpop.eup %1425  ;;  %v1096_v55 = vmul.f32 %v1424_v6, %v2168_v62  ;;  %vm1065_vm12 = vcmp.gt.f32.partialorder %v2250_v12, 0.0 }
 0x577   : > { %1433 = vrcp.f32 %v1079_v51  ;;  %v2248_v53 = vpop.xlane.xlu1 %1041  ;;  %v1092_v56 = vmul.f32 %v1426_v13, %v2170_v39 }
 0x578   : > { %v1082_v3 = vmax.f32 %v2248_v53, 1.0  ;;  %v1157_v21 = vsel %vm1061_vm5, %v1096_v55, %v1656_v18  ;;  %vm1066_vm11 = vcmp.gt.f32.partialorder %v2248_v53, 0.0 }
 0x579   : > { %v2260_v40 = vpop.xlane.xlu0 %1043  ;;  %v1428_v54 = vpop.eup %1427  ;;  %v1174_v60 = vsel %vm1171_vm0, %v1157_v21, 0.0  ;;  %v1155_v57 = vsel %vm1059_vm6, %v1092_v56, %v1651_v17 }
 0x57a   : > { %1435 = vrcp.f32 %v1082_v3  ;;  %v1430_v15 = vpop.eup %1429  ;;  %1190 = vst [vmem:[%s2406_s2 + $0x10] sm:$0xff] %v1174_v60  ;;  %v1172_v18 = vsel %vm1171_vm0, %v1155_v57, 0.0  ;;  %v1098_v39 = vmul.f32 %v1428_v54, %v2172_v44  ;;  %v1083_v7 = vmax.f32 %v2260_v40, 1.0 }
 0x57b   : > { %1437 = vrcp.f32 %v1081_v52  ;;  %v2258_v14 = vpop.xlane.xlu1 %1045  ;;  %1188 = vst [vmem:[%s2406_s2] sm:$0xff] %v1172_v18  ;;  %v1094_v17 = vmul.f32 %v1430_v15, %v2180_v10  ;;  %vm1067_vm14 = vcmp.gt.f32.partialorder %v2260_v40, 0.0 }
 0x57c   : > { %v1084_v62 = vmax.f32 %v2258_v14, 1.0  ;;  %v1158_v9 = vsel %vm1062_vm7, %v1098_v39, %v1670_v22  ;;  %vm1068_vm13 = vcmp.gt.f32.partialorder %v2258_v14, 0.0 }
 0x57d   : > { %v2280_v31 = vpop.xlane.xlu0 %1047  ;;  %v1175_v44 = vsel %vm1171_vm0, %v1158_v9, 0.0  ;;  %v1156_v48 = vsel %vm1060_vm8, %v1094_v17, %v1661_v19 }
 0x57e   : > { %1439 = vrcp.f32 %v1084_v62  ;;  %1191 = vst [vmem:[%s2406_s2 + $0x18] sm:$0xff] %v1175_v44  ;;  %v1173_v22 = vsel %vm1171_vm0, %v1156_v48, 0.0  ;;  %v1085_v1 = vmax.f32 %v2280_v31, 1.0  ;;  %vm1069_vm1 = vcmp.gt.f32.partialorder %v2280_v31, 0.0 }
 0x57f   : > { %1441 = vrcp.f32 %v1083_v7  ;;  %v2278_v61 = vpop.xlane.xlu1 %1049  ;;  %1189 = vst [vmem:[%s2406_s2 + $0x8] sm:$0xff] %v1173_v22 }
 0x580   : > { %v1432_v4 = vpop.eup %1431  ;;  %v1086_v35 = vmax.f32 %v2278_v61, 1.0  ;;  %vm1070_vm15 = vcmp.gt.f32.partialorder %v2278_v61, 0.0 }
 0x581   : > { %v1434_v28 = vpop.eup %1433  ;;  %v1102_v10 = vmul.f32 %v1432_v4, %v2188_v27  ;;  %v2298_v2 = vpop.xlane.xlu0 %1051 }
 0x582   : > { %v1100_v19 = vmul.f32 %v1434_v28, %v2190_v47  ;;  %1443 = vrcp.f32 %v1086_v35  ;;  %v1087_v32 = vmax.f32 %v2298_v2, 1.0  ;;  %vm1071_vm3 = vcmp.gt.f32.partialorder %v2298_v2, 0.0 }
 0x583   : > { %v1160_v11 = vsel %vm1064_vm9, %v1102_v10, %v1679_v25  ;;  %1445 = vrcp.f32 %v1085_v1  ;;  %v1054_v0 = vpop.xlane.xlu1 %1053 }
 0x584   : > { %v1436_v36 = vpop.eup %1435  ;;  %v1177_v27 = vsel %vm1171_vm0, %v1160_v11, 0.0  ;;  %v1159_v51 = vsel %vm1063_vm10, %v1100_v19, %v1684_v26  ;;  %v1088_v6 = vmax.f32 %v1054_v0, 1.0  ;;  %vm1072_vm2 = vcmp.gt.f32.partialorder %v1054_v0, 0.0 }
 0x585   : > { %v1438_v3 = vpop.eup %1437  ;;  %1193 = vst [vmem:[%s2406_s2 + $0x28] sm:$0xff] %v1177_v27  ;;  %v1176_v25 = vsel %vm1171_vm0, %v1159_v51, 0.0  ;;  %v1106_v47 = vmul.f32 %v1436_v36, %v2198_v50  ;;  %v1056_v13 = vpop.xlane.xlu0 %1055 }
 0x586   : > { %1192 = vst [vmem:[%s2406_s2 + $0x20] sm:$0xff] %v1176_v25  ;;  %v1104_v26 = vmul.f32 %v1438_v3, %v2200_v49  ;;  %1447 = vrcp.f32 %v1088_v6  ;;  %v1089_v53 = vmax.f32 %v1056_v13, 1.0  ;;  %vm1073_vm5 = vcmp.gt.f32.partialorder %v1056_v13, 0.0 }
 0x587   : > { %v1162_v8 = vsel %vm1066_vm11, %v1106_v47, %v1693_v29  ;;  %1449 = vrcp.f32 %v1087_v32  ;;  %v1058_v52 = vpop.xlane.xlu1 %1057 }
 0x588   : > { %v1440_v55 = vpop.eup %1439  ;;  %v1179_v50 = vsel %vm1171_vm0, %v1162_v8, 0.0  ;;  %v1161_v56 = vsel %vm1065_vm12, %v1104_v26, %v1698_v30  ;;  %v1090_v21 = vmax.f32 %v1058_v52, 1.0  ;;  %vm1074_vm4 = vcmp.gt.f32.partialorder %v1058_v52, 0.0 }
 0x589   : > { %v1442_v54 = vpop.eup %1441  ;;  %1195 = vst [vmem:[%s2406_s2 + $0x38] sm:$0xff] %v1179_v50  ;;  %v1178_v29 = vsel %vm1171_vm0, %v1161_v56, 0.0  ;;  %v1110_v49 = vmul.f32 %v1440_v55, %v2208_v16 }
 0x58a   : > { %1194 = vst [vmem:[%s2406_s2 + $0x30] sm:$0xff] %v1178_v29  ;;  %v1108_v30 = vmul.f32 %v1442_v54, %v2210_v43  ;;  %1451 = vrcp.f32 %v1090_v21 }
 0x58b   : > { %v1164_v12 = vsel %vm1068_vm13, %v1110_v49, %v1707_v33  ;;  %1453 = vrcp.f32 %v1089_v53 }
 0x58c   : > { %v1444_v60 = vpop.eup %1443  ;;  %v1181_v57 = vsel %vm1171_vm0, %v1164_v12, 0.0  ;;  %v1163_v16 = vsel %vm1067_vm14, %v1108_v30, %v1712_v34 }
 0x58d   : > { %v1446_v62 = vpop.eup %1445  ;;  %1197 = vst [vmem:[%s2406_s2 + $0x48] sm:$0xff] %v1181_v57  ;;  %v1180_v43 = vsel %vm1171_vm0, %v1163_v16, 0.0  ;;  %v1114_v14 = vmul.f32 %v1444_v60, %v2218_v20 }
 0x58e   : > { %1196 = vst [vmem:[%s2406_s2 + $0x40] sm:$0xff] %v1180_v43  ;;  %v1112_v33 = vmul.f32 %v1446_v62, %v2220_v63 }
 0x58f   : > { %v1166_v34 = vsel %vm1070_vm15, %v1114_v14, %v1721_v37 }
 0x590   : > { %v1448_v40 = vpop.eup %1447  ;;  %v1183_v15 = vsel %vm1171_vm0, %v1166_v34, 0.0  ;;  %v1165_v18 = vsel %vm1069_vm1, %v1112_v33, %v1726_v38 }
 0x591   : > { %v1450_v39 = vpop.eup %1449  ;;  %1199 = vst [vmem:[%s2406_s2 + $0x58] sm:$0xff] %v1183_v15  ;;  %v1182_v20 = vsel %vm1171_vm0, %v1165_v18, 0.0  ;;  %v1118_v63 = vmul.f32 %v1448_v40, %v2228_v5 }
 0x592   : > { %1198 = vst [vmem:[%s2406_s2 + $0x50] sm:$0xff] %v1182_v20  ;;  %v1116_v37 = vmul.f32 %v1450_v39, %v2230_v23 }
 0x593   : > { %v1168_v7 = vsel %vm1072_vm2, %v1118_v63, %v1735_v41 }
 0x594   : > { %v1452_v38 = vpop.eup %1451  ;;  %v1185_v17 = vsel %vm1171_vm0, %v1168_v7, 0.0  ;;  %v1167_v9 = vsel %vm1071_vm3, %v1116_v37, %v1740_v42 }
 0x595   : > { %v1454_v61 = vpop.eup %1453  ;;  %1201 = vst [vmem:[%s2406_s2 + $0x68] sm:$0xff] %v1185_v17  ;;  %v1184_v5 = vsel %vm1171_vm0, %v1167_v9, 0.0  ;;  %v1122_v23 = vmul.f32 %v1452_v38, %v2238_v59 }
 0x596   : > { %1200 = vst [vmem:[%s2406_s2 + $0x60] sm:$0xff] %v1184_v5  ;;  %v1120_v41 = vmul.f32 %v1454_v61, %v2240_v24 }
 0x597   : > { %v1170_v31 = vsel %vm1074_vm4, %v1122_v23, %v1749_v45 }
 0x598   : > { %v1187_v42 = vsel %vm1171_vm0, %v1170_v31, 0.0  ;;  %v1169_v4 = vsel %vm1073_vm5, %v1120_v41, %v1754_v46 }
 0x599   : > { %1203 = vst [vmem:[%s2406_s2 + $0x78] sm:$0xff] %v1187_v42  ;;  %v1186_v59 = vsel %vm1171_vm0, %v1169_v4, 0.0 }
 0x59a   : > { %1202 = vst [vmem:[%s2406_s2 + $0x70] sm:$0xff] %v1186_v59 }
 0x59b PF: > { %s12_s13 = sadd.s32 1, %s1493_s13   ;;  %s2407_s9 = smov %s1485_s11 }
 0x59c   : > { %p9_p11 = scmp.ge.s32.totalorder %s12_s13, 22   ;;  %s2408_s10 = smov %s1489_s12 }
 0x59d   : > { %s2409_s11 = smov %s2412_s14  ;;  %s2410_s12 = smov %s2416_s15 }
 0x59e   :  { %11 = sbr.rel (!%p9_p11) target bundleno = 3 (0x3), region = 66 }

</bundles_post_ra>
